<compile_context>
chip_gen: v7x
topology: tpu7x:2x2x1
jax: 0.10.0
libtpu: 0.0.40
codegen_flags: <defaults>
</compile_context>

<pallas_src>
import functools

import jax
import jax.numpy as jnp
from jax.experimental import pallas as pl
from jax.experimental.pallas import tpu as pltpu

LANE = 128
COMPUTE_DTYPE = jnp.bfloat16   # MXU operand dtype; accumulation is always f32


def _round_up(n, m):
    return ((n + m - 1) // m) * m


# ----------------------------------------------------------------------------
# Fused kernel: Conv2d(3x3, pad=1)+ReLU  ->  [Linear+ReLU(+Dropout=id)]* -> Linear
# One grid step == one image.
# ----------------------------------------------------------------------------
def _fused_kernel(*refs, n_fc, O, Wq, P):
    # refs = [xq, wc, bc, w1e, b1, (w2, b2), ..., (w_last, b_last), out]
    xq_ref, wc_ref, bc_ref = refs[0], refs[1], refs[2]
    fc_refs = refs[3:3 + 2 * n_fc]
    o_ref = refs[3 + 2 * n_fc]

    # ---- conv, transposed layout: channels on sublanes, padded-spatial on lanes
    x = xq_ref[0]                                   # (Cp, Hq*Wq) f32, zero-padded
    slabs = []
    for ky in range(3):                             # build shifted-tap matrix once
        for kx in range(3):
            d = ky * Wq + kx                        # static lane offset per tap
            slabs.append(x[:, d:d + P])             # (Cp, P)
    at = jnp.concatenate(slabs, axis=0)             # (9*Cp, P) "im2col^T" in VMEM
    featT = jnp.dot(wc_ref[...], at.astype(COMPUTE_DTYPE),
                    preferred_element_type=jnp.float32)      # (O, P) single K=72 pass
    featT = jnp.maximum(featT + bc_ref[...], 0.0)   # bias (O,1) broadcast + ReLU

    # ---- fc1: contract over padded-spatial per output channel (no relayout).
    # fc1 weight is pre-expanded to (O, P, F1) with zeros at garbage columns.
    w1_ref, b1_ref = fc_refs[0], fc_refs[1]
    h = b1_ref[...]                                 # (1, F1) f32
    for o in range(O):                              # O is tiny (8): unrolled
        row = featT[o:o + 1, :].astype(COMPUTE_DTYPE)         # (1, P)
        h = h + jnp.dot(row, w1_ref[o], preferred_element_type=jnp.float32)
    if n_fc > 1:
        h = jnp.maximum(h, 0.0)                     # ReLU (+Dropout == id in eval)

    # ---- remaining Linear layers, all VMEM-resident, activations stay in vregs
    for i in range(1, n_fc):
        w_ref, b_ref = fc_refs[2 * i], fc_refs[2 * i + 1]
        h = jnp.dot(h.astype(COMPUTE_DTYPE), w_ref[...],
                    preferred_element_type=jnp.float32) + b_ref[...]
        if i < n_fc - 1:
            h = jnp.maximum(h, 0.0)

    o_ref[0] = h.astype(o_ref.dtype)                # lane-dense (1, Npad) store


# ----------------------------------------------------------------------------
# Wrapper: minimal XLA glue + one pallas_call
# ----------------------------------------------------------------------------
def model_forward(x_nchw, prepared):
    B, C, H, W = x_nchw.shape
    Cp, O = prepared["Cp"], prepared["O"]
    Wq, Hq = W + 2, H + 3                 # +1 left/right, +1 top, +2 bottom (slack)
    P = H * Wq                            # conv rows computed (cols W..W+1 = garbage)

    # Pad channels->Cp and spatial (NCHW kept natively; no transpose), flatten HW.
    xq = jnp.pad(x_nchw, ((0, 0), (0, Cp - C), (1, 2), (1, 1)))
    xq = xq.reshape(B, Cp, Hq * Wq)

    fc_ws, fc_bs = prepared["fc_ws"], prepared["fc_bs"]
    n_fc = len(fc_ws)
    Npad = fc_ws[-1].shape[-1]

    def _resident(arr):                   # weight/bias: same block every grid step
        z = (0,) * arr.ndim
        return pl.BlockSpec(arr.shape, lambda b, _z=z: _z)

    args = [xq, prepared["wc"], prepared["bc"]]
    in_specs = [pl.BlockSpec((1, Cp, Hq * Wq), lambda b: (b, 0, 0)),
                _resident(prepared["wc"]), _resident(prepared["bc"])]
    for w, bb in zip(fc_ws, fc_bs):
        args += [w, bb]
        in_specs += [_resident(w), _resident(bb)]

    out = pl.pallas_call(
        functools.partial(_fused_kernel, n_fc=n_fc, O=O, Wq=Wq, P=P),
        out_shape=jax.ShapeDtypeStruct((B, 1, Npad), jnp.float32),
        grid=(B,),
        in_specs=in_specs,
        out_specs=pl.BlockSpec((1, 1, Npad), lambda b: (b, 0, 0)),
        compiler_params=pltpu.CompilerParams(
            dimension_semantics=("parallel",)),   # split batch over v7x's 2 TCs
    )(*args)
    return out[:, 0, :prepared["n_out"]]          # match PyTorch output shape


# ----------------------------------------------------------------------------
# Parameter init (torch-like layouts) + one-time prepare (layout/pad/dtype)
# ----------------------------------------------------------------------------
def init_params(key, c_in, c_out, fc_sizes):
    n_fc = len(fc_sizes) - 1
    keys = jax.random.split(key, 2 + 2 * n_fc)
    conv_w = 0.1 * jax.random.normal(keys[0], (c_out, c_in, 3, 3), jnp.float32)
    conv_b = 0.1 * jax.random.normal(keys[1], (c_out,), jnp.float32)
    fc_ws, fc_bs = [], []
    for i in range(n_fc):
        scale = 1.0 / jnp.sqrt(jnp.float32(fc_sizes[i]))
        fc_ws.append(scale * jax.random.normal(
            keys[2 + 2 * i], (fc_sizes[i], fc_sizes[i + 1]), jnp.float32))
        fc_bs.append(scale * jax.random.normal(
            keys[3 + 2 * i], (fc_sizes[i + 1],), jnp.float32))
    return {"conv_w": conv_w, "conv_b": conv_b, "fc_ws": fc_ws, "fc_bs": fc_bs}


def prepare_params(params, H, W):
    """Host-side, one-time: conv weight -> (O, 9*Cp), fc1 -> (O, P, F1), pads."""
    conv_w, conv_b = params["conv_w"], params["conv_b"]       # (O,C,3,3), (O,)
    O, C = conv_w.shape[0], conv_w.shape[1]
    Cp = _round_up(C, 8)
    Wq = W + 2
    P = H * Wq

    w_t = jnp.transpose(conv_w, (2, 3, 1, 0))                 # (3,3,C,O)
    w_t = jnp.pad(w_t, ((0, 0), (0, 0), (0, Cp - C), (0, 0))) # zero padded channels
    wc = w_t.reshape(9 * Cp, O).T                             # (O, 9*Cp), tap-major
    bc = conv_b.reshape(O, 1)

    fc_ws = list(params["fc_ws"])                             # stored as (in, out)
    fc_bs = list(params["fc_bs"])
    n_fc = len(fc_ws)
    F1 = fc_ws[0].shape[1]
    assert fc_ws[0].shape[0] == O * H * W
    # Expand fc1 to the conv's native transposed layout: (O, P=H*Wq, F1),
    # zero rows at the garbage columns w in [W, Wq).
    w1 = fc_ws[0].reshape(O, H, W, F1)
    w1 = jnp.pad(w1, ((0, 0), (0, 0), (0, Wq - W), (0, 0))).reshape(O, P, F1)
    ws = [w1] + fc_ws[1:]
    bs = fc_bs

    n_out = ws[-1].shape[-1]
    Npad = _round_up(n_out, LANE)                             # lane-dense final store
    pad_cfg = [(0, 0)] * (ws[-1].ndim - 1) + [(0, Npad - n_out)]
    ws[-1] = jnp.pad(ws[-1], pad_cfg)
    bs[-1] = jnp.pad(bs[-1], (0, Npad - n_out))

    return {
        "wc": wc.astype(COMPUTE_DTYPE),
        "bc": bc.astype(jnp.float32),
        "O": O, "Cp": Cp, "n_out": n_out,
        "fc_ws": [w.astype(COMPUTE_DTYPE) for w in ws],
        "fc_bs": [b.reshape(1, -1).astype(jnp.float32) for b in bs],
    }


# ----------------------------------------------------------------------------
# Pure-XLA f32 reference (for a loose sanity check; kernel uses bf16 operands)
# ----------------------------------------------------------------------------
def reference_forward(x, params):
    feat = jax.lax.conv_general_dilated(
        x, params["conv_w"], window_strides=(1, 1), padding="SAME",
        dimension_numbers=("NCHW", "OIHW", "NCHW"))
    feat = jnp.maximum(feat + params["conv_b"][None, :, None, None], 0.0)
    h = feat.reshape(x.shape[0], -1)
    n_fc = len(params["fc_ws"])
    for i, (w, b) in enumerate(zip(params["fc_ws"], params["fc_bs"])):
        h = h @ w + b
        if i < n_fc - 1:
            h = jnp.maximum(h, 0.0)
    return h


if __name__ == "__main__":
    B, C, H, W = 2, 4, 16, 16
    C_OUT = 8
    fc_sizes = [C_OUT * H * W, 32, 32, 8]   # 2 hidden (Linear+ReLU+Dropout) + final

    key = jax.random.PRNGKey(0)
    kx, kp = jax.random.split(key)
    x = jax.random.normal(kx, (B, C, H, W), jnp.float32)
    params = init_params(kp, C, C_OUT, fc_sizes)
    prepared = prepare_params(params, H, W)

    fwd = jax.jit(lambda xx: model_forward(xx, prepared))
    out = jax.block_until_ready(fwd(x))
    assert out.shape == (B, fc_sizes[-1]), out.shape

    ref = reference_forward(x, params)
    err = float(jnp.max(jnp.abs(out - ref)))
    assert err < 0.15, f"max abs err vs f32 reference: {err}"
    print("KERNEL_OK")
</pallas_src>

<mosaic_0001>
module attributes {stable_mosaic.version = 11 : i64} {
  func.func @_fused_kernel(%arg0: i32, %arg1: memref<1x8x342xf32, #tpu.memory_space<vmem>>, %arg2: memref<8x72xbf16, #tpu.memory_space<vmem>>, %arg3: memref<8x1xf32, #tpu.memory_space<vmem>>, %arg4: memref<8x288x32xbf16, #tpu.memory_space<vmem>>, %arg5: memref<1x32xf32, #tpu.memory_space<vmem>>, %arg6: memref<32x32xbf16, #tpu.memory_space<vmem>>, %arg7: memref<1x32xf32, #tpu.memory_space<vmem>>, %arg8: memref<32x128xbf16, #tpu.memory_space<vmem>>, %arg9: memref<1x128xf32, #tpu.memory_space<vmem>>, %arg10: memref<1x1x128xf32, #tpu.memory_space<vmem>>) attributes {dimension_semantics = [#tpu.dimension_semantics<parallel>], iteration_bounds = array<i64: 2>, scalar_prefetch = 0 : i64, scratch_operands = 0 : i64, tpu.core_type = #tpu.core_type<tc>, window_params = [{transform_indices = @transform_0, window_bounds = array<i64: 1, 8, 342>}, {pipeline_mode = #tpu.pipeline_mode<synchronous>, transform_indices = @transform_1, window_bounds = array<i64: 8, 72>}, {pipeline_mode = #tpu.pipeline_mode<synchronous>, transform_indices = @transform_2, window_bounds = array<i64: 8, 1>}, {pipeline_mode = #tpu.pipeline_mode<synchronous>, transform_indices = @transform_3, window_bounds = array<i64: 8, 288, 32>}, {pipeline_mode = #tpu.pipeline_mode<synchronous>, transform_indices = @transform_4, window_bounds = array<i64: 1, 32>}, {pipeline_mode = #tpu.pipeline_mode<synchronous>, transform_indices = @transform_5, window_bounds = array<i64: 32, 32>}, {pipeline_mode = #tpu.pipeline_mode<synchronous>, transform_indices = @transform_6, window_bounds = array<i64: 1, 32>}, {pipeline_mode = #tpu.pipeline_mode<synchronous>, transform_indices = @transform_7, window_bounds = array<i64: 32, 128>}, {pipeline_mode = #tpu.pipeline_mode<synchronous>, transform_indices = @transform_8, window_bounds = array<i64: 1, 128>}, {transform_indices = @transform_9, window_bounds = array<i64: 1, 1, 128>}]} {
    %c0 = arith.constant 0 : index
    %c0_0 = arith.constant 0 : index
    %c0_1 = arith.constant 0 : index
    %0 = vector.load %arg1[%c0, %c0_0, %c0_1] : memref<1x8x342xf32, #tpu.memory_space<vmem>>, vector<1x8x342xf32>
    %1 = vector.shape_cast %0 : vector<1x8x342xf32> to vector<8x342xf32>
    %2 = vector.extract_strided_slice %1 {offsets = [0, 0], sizes = [8, 288], strides = [1, 1]} : vector<8x342xf32> to vector<8x288xf32>
    %3 = vector.extract_strided_slice %1 {offsets = [0, 1], sizes = [8, 288], strides = [1, 1]} : vector<8x342xf32> to vector<8x288xf32>
    %4 = vector.extract_strided_slice %1 {offsets = [0, 2], sizes = [8, 288], strides = [1, 1]} : vector<8x342xf32> to vector<8x288xf32>
    %5 = vector.extract_strided_slice %1 {offsets = [0, 18], sizes = [8, 288], strides = [1, 1]} : vector<8x342xf32> to vector<8x288xf32>
    %6 = vector.extract_strided_slice %1 {offsets = [0, 19], sizes = [8, 288], strides = [1, 1]} : vector<8x342xf32> to vector<8x288xf32>
    %7 = vector.extract_strided_slice %1 {offsets = [0, 20], sizes = [8, 288], strides = [1, 1]} : vector<8x342xf32> to vector<8x288xf32>
    %8 = vector.extract_strided_slice %1 {offsets = [0, 36], sizes = [8, 288], strides = [1, 1]} : vector<8x342xf32> to vector<8x288xf32>
    %9 = vector.extract_strided_slice %1 {offsets = [0, 37], sizes = [8, 288], strides = [1, 1]} : vector<8x342xf32> to vector<8x288xf32>
    %10 = vector.extract_strided_slice %1 {offsets = [0, 38], sizes = [8, 288], strides = [1, 1]} : vector<8x342xf32> to vector<8x288xf32>
    %11 = tpu.concatenate %2, %3, %4, %5, %6, %7, %8, %9, %10 in 0 : vector<8x288xf32>, vector<8x288xf32>, vector<8x288xf32>, vector<8x288xf32>, vector<8x288xf32>, vector<8x288xf32>, vector<8x288xf32>, vector<8x288xf32>, vector<8x288xf32> -> vector<72x288xf32>
    %c0_2 = arith.constant 0 : index
    %c0_3 = arith.constant 0 : index
    %12 = vector.load %arg2[%c0_2, %c0_3] : memref<8x72xbf16, #tpu.memory_space<vmem>>, vector<8x72xbf16>
    %13 = arith.truncf %11 : vector<72x288xf32> to vector<72x288xbf16>
    %cst = arith.constant dense<0.000000e+00> : vector<8x288xf32>
    %14 = tpu.matmul %12, %13, %cst {dimension_numbers = #tpu.dot_dimension_numbers<[1], [0], [0], [1], [0, 0, 1, 1], [], []>} : vector<8x72xbf16>, vector<72x288xbf16>, vector<8x288xf32> -> vector<8x288xf32>
    %c0_4 = arith.constant 0 : index
    %c0_5 = arith.constant 0 : index
    %15 = vector.load %arg3[%c0_4, %c0_5] : memref<8x1xf32, #tpu.memory_space<vmem>>, vector<8x1xf32>
    %16 = vector.broadcast %15 : vector<8x1xf32> to vector<8x288xf32>
    %17 = arith.addf %14, %16 : vector<8x288xf32>
    %cst_6 = arith.constant 0.000000e+00 : f32
    %18 = vector.broadcast %cst_6 : f32 to vector<8x288xf32>
    %19 = arith.maximumf %17, %18 : vector<8x288xf32>
    %c0_7 = arith.constant 0 : index
    %c0_8 = arith.constant 0 : index
    %20 = vector.load %arg5[%c0_7, %c0_8] : memref<1x32xf32, #tpu.memory_space<vmem>>, vector<1x32xf32>
    %21 = vector.extract_strided_slice %19 {offsets = [0, 0], sizes = [1, 288], strides = [1, 1]} : vector<8x288xf32> to vector<1x288xf32>
    %22 = arith.truncf %21 : vector<1x288xf32> to vector<1x288xbf16>
    %c0_9 = arith.constant 0 : index
    %c0_10 = arith.constant 0 : index
    %c0_11 = arith.constant 0 : index
    %23 = vector.load %arg4[%c0_9, %c0_10, %c0_11] : memref<8x288x32xbf16, #tpu.memory_space<vmem>>, vector<1x288x32xbf16>
    %24 = vector.shape_cast %23 : vector<1x288x32xbf16> to vector<288x32xbf16>
    %cst_12 = arith.constant dense<0.000000e+00> : vector<1x32xf32>
    %25 = tpu.matmul %22, %24, %cst_12 {dimension_numbers = #tpu.dot_dimension_numbers<[1], [0], [0], [1], [0, 0, 1, 1], [], []>} : vector<1x288xbf16>, vector<288x32xbf16>, vector<1x32xf32> -> vector<1x32xf32>
    %26 = arith.addf %20, %25 : vector<1x32xf32>
    %27 = vector.extract_strided_slice %19 {offsets = [1, 0], sizes = [1, 288], strides = [1, 1]} : vector<8x288xf32> to vector<1x288xf32>
    %28 = arith.truncf %27 : vector<1x288xf32> to vector<1x288xbf16>
    %c1 = arith.constant 1 : index
    %c0_13 = arith.constant 0 : index
    %c0_14 = arith.constant 0 : index
    %29 = vector.load %arg4[%c1, %c0_13, %c0_14] : memref<8x288x32xbf16, #tpu.memory_space<vmem>>, vector<1x288x32xbf16>
    %30 = vector.shape_cast %29 : vector<1x288x32xbf16> to vector<288x32xbf16>
    %cst_15 = arith.constant dense<0.000000e+00> : vector<1x32xf32>
    %31 = tpu.matmul %28, %30, %cst_15 {dimension_numbers = #tpu.dot_dimension_numbers<[1], [0], [0], [1], [0, 0, 1, 1], [], []>} : vector<1x288xbf16>, vector<288x32xbf16>, vector<1x32xf32> -> vector<1x32xf32>
    %32 = arith.addf %26, %31 : vector<1x32xf32>
    %33 = vector.extract_strided_slice %19 {offsets = [2, 0], sizes = [1, 288], strides = [1, 1]} : vector<8x288xf32> to vector<1x288xf32>
    %34 = arith.truncf %33 : vector<1x288xf32> to vector<1x288xbf16>
    %c2 = arith.constant 2 : index
    %c0_16 = arith.constant 0 : index
    %c0_17 = arith.constant 0 : index
    %35 = vector.load %arg4[%c2, %c0_16, %c0_17] : memref<8x288x32xbf16, #tpu.memory_space<vmem>>, vector<1x288x32xbf16>
    %36 = vector.shape_cast %35 : vector<1x288x32xbf16> to vector<288x32xbf16>
    %cst_18 = arith.constant dense<0.000000e+00> : vector<1x32xf32>
    %37 = tpu.matmul %34, %36, %cst_18 {dimension_numbers = #tpu.dot_dimension_numbers<[1], [0], [0], [1], [0, 0, 1, 1], [], []>} : vector<1x288xbf16>, vector<288x32xbf16>, vector<1x32xf32> -> vector<1x32xf32>
    %38 = arith.addf %32, %37 : vector<1x32xf32>
    %39 = vector.extract_strided_slice %19 {offsets = [3, 0], sizes = [1, 288], strides = [1, 1]} : vector<8x288xf32> to vector<1x288xf32>
    %40 = arith.truncf %39 : vector<1x288xf32> to vector<1x288xbf16>
    %c3 = arith.constant 3 : index
    %c0_19 = arith.constant 0 : index
    %c0_20 = arith.constant 0 : index
    %41 = vector.load %arg4[%c3, %c0_19, %c0_20] : memref<8x288x32xbf16, #tpu.memory_space<vmem>>, vector<1x288x32xbf16>
    %42 = vector.shape_cast %41 : vector<1x288x32xbf16> to vector<288x32xbf16>
    %cst_21 = arith.constant dense<0.000000e+00> : vector<1x32xf32>
    %43 = tpu.matmul %40, %42, %cst_21 {dimension_numbers = #tpu.dot_dimension_numbers<[1], [0], [0], [1], [0, 0, 1, 1], [], []>} : vector<1x288xbf16>, vector<288x32xbf16>, vector<1x32xf32> -> vector<1x32xf32>
    %44 = arith.addf %38, %43 : vector<1x32xf32>
    %45 = vector.extract_strided_slice %19 {offsets = [4, 0], sizes = [1, 288], strides = [1, 1]} : vector<8x288xf32> to vector<1x288xf32>
    %46 = arith.truncf %45 : vector<1x288xf32> to vector<1x288xbf16>
    %c4 = arith.constant 4 : index
    %c0_22 = arith.constant 0 : index
    %c0_23 = arith.constant 0 : index
    %47 = vector.load %arg4[%c4, %c0_22, %c0_23] : memref<8x288x32xbf16, #tpu.memory_space<vmem>>, vector<1x288x32xbf16>
    %48 = vector.shape_cast %47 : vector<1x288x32xbf16> to vector<288x32xbf16>
    %cst_24 = arith.constant dense<0.000000e+00> : vector<1x32xf32>
    %49 = tpu.matmul %46, %48, %cst_24 {dimension_numbers = #tpu.dot_dimension_numbers<[1], [0], [0], [1], [0, 0, 1, 1], [], []>} : vector<1x288xbf16>, vector<288x32xbf16>, vector<1x32xf32> -> vector<1x32xf32>
    %50 = arith.addf %44, %49 : vector<1x32xf32>
    %51 = vector.extract_strided_slice %19 {offsets = [5, 0], sizes = [1, 288], strides = [1, 1]} : vector<8x288xf32> to vector<1x288xf32>
    %52 = arith.truncf %51 : vector<1x288xf32> to vector<1x288xbf16>
    %c5 = arith.constant 5 : index
    %c0_25 = arith.constant 0 : index
    %c0_26 = arith.constant 0 : index
    %53 = vector.load %arg4[%c5, %c0_25, %c0_26] : memref<8x288x32xbf16, #tpu.memory_space<vmem>>, vector<1x288x32xbf16>
    %54 = vector.shape_cast %53 : vector<1x288x32xbf16> to vector<288x32xbf16>
    %cst_27 = arith.constant dense<0.000000e+00> : vector<1x32xf32>
    %55 = tpu.matmul %52, %54, %cst_27 {dimension_numbers = #tpu.dot_dimension_numbers<[1], [0], [0], [1], [0, 0, 1, 1], [], []>} : vector<1x288xbf16>, vector<288x32xbf16>, vector<1x32xf32> -> vector<1x32xf32>
    %56 = arith.addf %50, %55 : vector<1x32xf32>
    %57 = vector.extract_strided_slice %19 {offsets = [6, 0], sizes = [1, 288], strides = [1, 1]} : vector<8x288xf32> to vector<1x288xf32>
    %58 = arith.truncf %57 : vector<1x288xf32> to vector<1x288xbf16>
    %c6 = arith.constant 6 : index
    %c0_28 = arith.constant 0 : index
    %c0_29 = arith.constant 0 : index
    %59 = vector.load %arg4[%c6, %c0_28, %c0_29] : memref<8x288x32xbf16, #tpu.memory_space<vmem>>, vector<1x288x32xbf16>
    %60 = vector.shape_cast %59 : vector<1x288x32xbf16> to vector<288x32xbf16>
    %cst_30 = arith.constant dense<0.000000e+00> : vector<1x32xf32>
    %61 = tpu.matmul %58, %60, %cst_30 {dimension_numbers = #tpu.dot_dimension_numbers<[1], [0], [0], [1], [0, 0, 1, 1], [], []>} : vector<1x288xbf16>, vector<288x32xbf16>, vector<1x32xf32> -> vector<1x32xf32>
    %62 = arith.addf %56, %61 : vector<1x32xf32>
    %63 = vector.extract_strided_slice %19 {offsets = [7, 0], sizes = [1, 288], strides = [1, 1]} : vector<8x288xf32> to vector<1x288xf32>
    %64 = arith.truncf %63 : vector<1x288xf32> to vector<1x288xbf16>
    %c7 = arith.constant 7 : index
    %c0_31 = arith.constant 0 : index
    %c0_32 = arith.constant 0 : index
    %65 = vector.load %arg4[%c7, %c0_31, %c0_32] : memref<8x288x32xbf16, #tpu.memory_space<vmem>>, vector<1x288x32xbf16>
    %66 = vector.shape_cast %65 : vector<1x288x32xbf16> to vector<288x32xbf16>
    %cst_33 = arith.constant dense<0.000000e+00> : vector<1x32xf32>
    %67 = tpu.matmul %64, %66, %cst_33 {dimension_numbers = #tpu.dot_dimension_numbers<[1], [0], [0], [1], [0, 0, 1, 1], [], []>} : vector<1x288xbf16>, vector<288x32xbf16>, vector<1x32xf32> -> vector<1x32xf32>
    %68 = arith.addf %62, %67 : vector<1x32xf32>
    %cst_34 = arith.constant 0.000000e+00 : f32
    %69 = vector.broadcast %cst_34 : f32 to vector<1x32xf32>
    %70 = arith.maximumf %68, %69 : vector<1x32xf32>
    %71 = arith.truncf %70 : vector<1x32xf32> to vector<1x32xbf16>
    %c0_35 = arith.constant 0 : index
    %c0_36 = arith.constant 0 : index
    %72 = vector.load %arg6[%c0_35, %c0_36] : memref<32x32xbf16, #tpu.memory_space<vmem>>, vector<32x32xbf16>
    %cst_37 = arith.constant dense<0.000000e+00> : vector<1x32xf32>
    %73 = tpu.matmul %71, %72, %cst_37 {dimension_numbers = #tpu.dot_dimension_numbers<[1], [0], [0], [1], [0, 0, 1, 1], [], []>} : vector<1x32xbf16>, vector<32x32xbf16>, vector<1x32xf32> -> vector<1x32xf32>
    %c0_38 = arith.constant 0 : index
    %c0_39 = arith.constant 0 : index
    %74 = vector.load %arg7[%c0_38, %c0_39] : memref<1x32xf32, #tpu.memory_space<vmem>>, vector<1x32xf32>
    %75 = arith.addf %73, %74 : vector<1x32xf32>
    %cst_40 = arith.constant 0.000000e+00 : f32
    %76 = vector.broadcast %cst_40 : f32 to vector<1x32xf32>
    %77 = arith.maximumf %75, %76 : vector<1x32xf32>
    %78 = arith.truncf %77 : vector<1x32xf32> to vector<1x32xbf16>
    %c0_41 = arith.constant 0 : index
    %c0_42 = arith.constant 0 : index
    %79 = vector.load %arg8[%c0_41, %c0_42] : memref<32x128xbf16, #tpu.memory_space<vmem>>, vector<32x128xbf16>
    %cst_43 = arith.constant dense<0.000000e+00> : vector<1x128xf32>
    %80 = tpu.matmul %78, %79, %cst_43 {dimension_numbers = #tpu.dot_dimension_numbers<[1], [0], [0], [1], [0, 0, 1, 1], [], []>} : vector<1x32xbf16>, vector<32x128xbf16>, vector<1x128xf32> -> vector<1x128xf32>
    %c0_44 = arith.constant 0 : index
    %c0_45 = arith.constant 0 : index
    %81 = vector.load %arg9[%c0_44, %c0_45] : memref<1x128xf32, #tpu.memory_space<vmem>>, vector<1x128xf32>
    %82 = arith.addf %80, %81 : vector<1x128xf32>
    %c0_46 = arith.constant 0 : index
    %c0_47 = arith.constant 0 : index
    %c0_48 = arith.constant 0 : index
    %83 = vector.load %arg10[%c0_46, %c0_47, %c0_48] : memref<1x1x128xf32, #tpu.memory_space<vmem>>, vector<1x1x128xf32>
    %84 = vector.shape_cast %83 : vector<1x1x128xf32> to vector<1x128xf32>
    %85 = vector.shape_cast %82 : vector<1x128xf32> to vector<1x1x128xf32>
    tpu.vector_store %arg10[%c0_46, %c0_47, %c0_48], %85 {strides = array<i32>} : memref<1x1x128xf32, #tpu.memory_space<vmem>>, vector<1x1x128xf32>,
    return
  }
  func.func @transform_0(%arg0: i32) -> (i32, i32, i32) {
    %c0_i32 = arith.constant 0 : i32
    %c0_i32_0 = arith.constant 0 : i32
    %c0_i32_1 = arith.constant 0 : i32
    return %arg0, %c0_i32, %c0_i32_0 : i32, i32, i32
  }
  func.func @transform_1(%arg0: i32) -> (i32, i32) {
    %c0_i32 = arith.constant 0 : i32
    %c0_i32_0 = arith.constant 0 : i32
    %c0_i32_1 = arith.constant 0 : i32
    return %c0_i32, %c0_i32_0 : i32, i32
  }
  func.func @transform_2(%arg0: i32) -> (i32, i32) {
    %c0_i32 = arith.constant 0 : i32
    %c0_i32_0 = arith.constant 0 : i32
    %c0_i32_1 = arith.constant 0 : i32
    return %c0_i32, %c0_i32_0 : i32, i32
  }
  func.func @transform_3(%arg0: i32) -> (i32, i32, i32) {
    %c0_i32 = arith.constant 0 : i32
    %c0_i32_0 = arith.constant 0 : i32
    %c0_i32_1 = arith.constant 0 : i32
    %c0_i32_2 = arith.constant 0 : i32
    return %c0_i32, %c0_i32_0, %c0_i32_1 : i32, i32, i32
  }
  func.func @transform_4(%arg0: i32) -> (i32, i32) {
    %c0_i32 = arith.constant 0 : i32
    %c0_i32_0 = arith.constant 0 : i32
    %c0_i32_1 = arith.constant 0 : i32
    return %c0_i32, %c0_i32_0 : i32, i32
  }
  func.func @transform_5(%arg0: i32) -> (i32, i32) {
    %c0_i32 = arith.constant 0 : i32
    %c0_i32_0 = arith.constant 0 : i32
    %c0_i32_1 = arith.constant 0 : i32
    return %c0_i32, %c0_i32_0 : i32, i32
  }
  func.func @transform_6(%arg0: i32) -> (i32, i32) {
    %c0_i32 = arith.constant 0 : i32
    %c0_i32_0 = arith.constant 0 : i32
    %c0_i32_1 = arith.constant 0 : i32
    return %c0_i32, %c0_i32_0 : i32, i32
  }
  func.func @transform_7(%arg0: i32) -> (i32, i32) {
    %c0_i32 = arith.constant 0 : i32
    %c0_i32_0 = arith.constant 0 : i32
    %c0_i32_1 = arith.constant 0 : i32
    return %c0_i32, %c0_i32_0 : i32, i32
  }
  func.func @transform_8(%arg0: i32) -> (i32, i32) {
    %c0_i32 = arith.constant 0 : i32
    %c0_i32_0 = arith.constant 0 : i32
    %c0_i32_1 = arith.constant 0 : i32
    return %c0_i32, %c0_i32_0 : i32, i32
  }
  func.func @transform_9(%arg0: i32) -> (i32, i32, i32) {
    %c0_i32 = arith.constant 0 : i32
    %c0_i32_0 = arith.constant 0 : i32
    %c0_i32_1 = arith.constant 0 : i32
    return %arg0, %c0_i32, %c0_i32_0 : i32, i32, i32
  }
}

</mosaic_0001>

<bundles_post_ra>
// kernel: _lambda_.1
= control target key start
LH: loop header
LB: loop body
LE: loop exit
PB: predicated region body
PF: predicated region fallthrough
CT: control target
= control target key end

     0   :  { %14 = vsyncpa [#allocation3], 0  ;;  %s3882_s0 = inlined_call_operand.vmem [shape: f32[2,8,342], index: 0, kind: input, shape index: {}]   ;;  %s3883_s1 = inlined_call_operand.vmem [shape: bf16[8,72], index: 1, kind: input, shape index: {}]   ;;  %s3884_s2 = inlined_call_operand.vmem [shape: f32[8,1], index: 2, kind: input, shape index: {}]   ;;  %s3885_s3 = inlined_call_operand.hbm [shape: bf16[8,288,32], index: 3, kind: input, shape index: {}]   ;;  %s3886_s4 = inlined_call_operand.vmem [shape: f32[1,32], index: 4, kind: input, shape index: {}]   ;;  %s3887_s5 = inlined_call_operand.vmem [shape: bf16[32,32], index: 5, kind: input, shape index: {}]   ;;  %s3888_s6 = inlined_call_operand.vmem [shape: f32[1,32], index: 6, kind: input, shape index: {}]   ;;  %s3889_s7 = inlined_call_operand.vmem [shape: bf16[32,128], index: 7, kind: input, shape index: {}]   ;;  %s3890_s8 = inlined_call_operand.vmem [shape: f32[1,128], index: 8, kind: input, shape index: {}]   ;;  %s3891_s9 = inlined_call_operand.hbm [shape: f32[2,1,128], index: 9, kind: output, shape index: {}]  }
   0x1   :  { %15 = vsyncpa [#allocation4], 0 }
   0x2   :  { %17 = vsyncpa [#allocation4 + $0x1], 0  ;;  %s3580_s30 = smov 0   ;;  %s3582_s10 = smov 0  }
   0x3   :  { %s3584_s11 = smov 0   ;;  %s3586_s12 = smov 0  }
   0x4 LB: > { %s3601_s13 = sadd.s32 4294967295, %s3513_s12   ;;  %s2652_s14 = sadd.s32 4294967294, %s3513_s12   ;;  %s3513_s12 = sphi %s3586_s12, %s3907_s12   ;;  %s3509_s11 = sphi %s3584_s11, %s3906_s11   ;;  %s3505_s10 = sphi %s3582_s10, %s3905_s10   ;;  %s3501_s30 = sphi %s3580_s30, %s3904_s30  }
   0x5   : > { %s3605_s15 = sadd.s32 1, %s3513_s12   ;;  %s224_s16 = sadd.s32 1, %s3509_s11 }
   0x6   : > { %s221_s17 = ssub.s32 %s3513_s12, %s3605_s15  ;;  %p234_p0 = scmp.ne.s32.totalorder %s3509_s11, %s3505_s10 }
   0x7   : > { %p222_p1 = scmp.eq.s32.totalorder %s221_s17, 0  ;;  %p235_p2 = scmp.eq.s32.totalorder %s3601_s13, 1 }
   0x8   : > { %p240_p3 = scmp.ne.s32.totalorder %s3505_s10, %s3501_s30  ;;  %p241_p4 = scmp.eq.s32.totalorder %s2652_s14, 1 }
   0x9   : > { %s3616_s18 = scalar_select %p222_p1, %s3509_s11, %s224_s16  }
   0xa   : > { %p3618_p5 = por %p235_p2, %p234_p0  ;;  %p3622_p6 = por %p241_p4, %p240_p3 }
   0xb   : > { %p2653_p7 = scmp.ge.s32.totalorder %s3513_s12, 1  ;;  %p248_p8 = scmp.lt.s32.totalorder %s3513_s12, 3 }
   0xc   : > { %s3895_s19 = scalar_select %p3618_p5, 1, 0 }
   0xd   : > { %s3896_s20 = scalar_select %p3622_p6, 1, 0 }
   0xe   : > { %p3892_p9 = scmp.eq.s32.totalorder %s3601_s13, 0  ;;  %p3629_p10 = pnand %p2653_p7, %p248_p8 }
   0xf   : > { %s3515_s22 = smov [#allocation2]   ;;  %s3419_s27 = scalar_lea.hbm %s3885_s3, 18432 }
  0x10   : > { %s3897_s21 = scalar_select %p3629_p10, 1, 0 }
  0x11   : > { %s266_s23 = sshll.u32 %s3515_s22, 4  ;;  %p3173_p11 = pneg %p3629_p10  ;;  %s267_s23 = int_to_ptr.vmem [resolvable:$true] %s266_s23 }
  0x12   : > { %p3420_p13 = scmp.ne.s32.totalorder %s3885_s3, %s3419_s27  ;;  %p3426_p3 = scmp.lt.u32.totalorder %s3419_s27, %s3885_s3 }
  0x13   : > { %p3637_p12 = pnand %p3892_p9, %p3173_p11 }
  0x15   : > { %p3421_p0 = pneg %p3637_p12 }
  0x17   : > { %p3422_p1 = pnand %p3421_p0, %p3420_p13 }
  0x19   : > { %p3423_p2 = pneg %p3422_p1 }
  0x1b   : > { %p3428_p4 = pnand %p3426_p3, %p3423_p2 }
  0x1d   : > { %3431 = shalt.err (!%p3428_p4)
}
  0x1e   : > { %s3432_s17 = scalar_lea.vmem %s267_s23, 18432  ;;  %p3440_p9 = scmp.lt.s32.totalorder %s267_s23, %s267_s23 }
  0x1f   : > { %p3433_p7 = scmp.ne.s32.totalorder %s267_s23, %s3432_s17  ;;  %p3441_p6 = scmp.lt.s32.totalorder %s3432_s17, %s3432_s17 }
  0x21   : > { %p3435_p8 = pnand %p3433_p7, %p3421_p0  ;;  %p3442_p5 = por %p3441_p6, %p3440_p9 }
  0x23   : > { %p3436_p11 = pneg %p3435_p8 }
  0x25   : > { %p3443_p10 = pnand %p3442_p5, %p3436_p11 }
  0x27   : > { %3446 = shalt.err (!%p3443_p10)
}
  0x28   : > { %s3516_s22 = smov 64   ;;  %s3517_s25 = smov 4  }
  0x29   : > { %3176 = dma.hbm_to_vmem [thread:$0]  (!%p3637_p12), %s3885_s3, 18432, %s267_s23, [#allocation3], %s3516_s22, %s3516_s22, %s3517_s25  }
  0x2a   : > { %p3899_p13 = scmp.ne.s32.totalorder %s3897_s21, 0 }
  0x2b   : > { %p3900_p1 = scmp.eq.s32.totalorder (!%p3899_p13), %s3601_s13, 0 }
  0x2c   : > { %305 = sbr.rel (%p3899_p13) target bundleno = 1246 (0x4de), region = 56 }
  0x33   : > { %3492 = dma.done.wait (%p3900_p1), [#allocation3], 18432   ;;  %p3901_p0 = pmov %p3900_p1 }
  0x34   : > { %p340_p5 = scmp.lt.s32.totalorder %s3601_s13, 1  ;;  %v3518_v0 = vmov 0.0   ;;  %s3519_s21 = smov 110   ;;  %vm3523_vm0 = vmmov 0   ;;  %v3528_v6 = vmov 0   ;;  %v464_v7 = vld [vmem:[%s3884_s2] sm:$0xff] }
  0x35   : > { %3494 = vsyncadd (%p3901_p0), [#allocation3], 4294948864  ;;  %3035 = vmatprep.subr.bf16.mxu1 %v3518_v0  ;;  %s3520_s16 = smov 127   ;;  %s3521_s17 = smov 109   ;;  %3045 = vmatprep.mubr.msk.bf16.mxu1 %vm3523_vm0, %v3518_v0  ;;  %vm474_vm1 = vcmask 1043456   ;;  %vm358_vm2 = vcmask 1039360  }
  0x36   : > { %s341_s24 = scalar_select %p340_p5, %s3601_s13, 1  ;;  %516 = vmatprep.mubr.bf16.mxu0 %v3528_v6  ;;  %3270 = vset.pattern.permute.xlu0 %v3528_v6  ;;  %v3706_v29 = vld [vmem:[%s3883_s1] sm:$0xf]  ;;  %vm470_vm3 = vcmask 588800   ;;  %vm370_vm4 = vcmask 1031168   ;;  %vm382_vm5 = vcmask 900096  }
  0x37   : > { %s3522_s22 = smov 126   ;;  %s3524_s25 = smov 92   ;;  %v3273_v35 = vld [vmem:[#allocation2 + $0x80] sm:$0xff]   ;;  %vm394_vm6 = vcmask 891904   ;;  %vm406_vm7 = vcmask 883712   ;;  %vm418_vm8 = vcmask 752640  }
  0x38   : > { %s3166_s27 = smul.u32 24, %s341_s24  ;;  %s3525_s26 = smov 108   ;;  %vm442_vm9 = vcmask 736256   ;;  %vm430_vm10 = vcmask 744448   ;;  %vm716_vm11 = vcmask 261120  }
  0x39   : > { %s3526_s28 = smov 90   ;;  %s3527_s24 = smov 91  }
  0x3a   : > { %s344_s23 = scalar_lea.vmem %s3882_s0, %s3166_s27  ;;  %p3902_p9 = scmp.ne.s32.totalorder %s3895_s19, 0 }
  0x3b   : > { %v348_v1 = vld [vmem:[%s344_s23 + $0x10] sm:$0xff]  ;;  %v3669_v2 = vld [vmem:[%s344_s23] sm:$0xff]  ;;  %v3673_v3 = vld [vmem:[%s344_s23 + $0x8] sm:$0xff]  ;;  %s3529_s14 = smov [#allocation5]  }
  0x3c   : > { %380 = vrot.lane.b32.xlu1 %v348_v1, %s3519_s21  ;;  %356 = vrot.lane.b32.xlu0 %v348_v1, %s3520_s16  ;;  %v3235_v4 = vpack.i.bf16 %v3669_v2, %v3673_v3  ;;  %v3265_v5 = vpack.i.bf16 %v3673_v3, %v3669_v2  ;;  %s3451_s23 = sshll.u32 %s3529_s14, 4  ;;  %s3452_s23 = int_to_ptr.vmem [resolvable:$false] %s3451_s23 }
  0x40   : > { %392 = vrot.lane.b32.xlu1 %v348_v1, %s3521_s17  ;;  %368 = vrot.lane.b32.xlu0 %v348_v1, %s3522_s22 }
  0x44   : > { %416 = vrot.lane.b32.xlu1 %v348_v1, %s3524_s25  ;;  %404 = vrot.lane.b32.xlu0 %v348_v1, %s3525_s26 }
  0x48   : > { %440 = vrot.lane.b32.xlu1 %v348_v1, %s3526_s28  ;;  %428 = vrot.lane.b32.xlu0 %v348_v1, %s3527_s24 }
  0x4c   : > { %3236 = vrot.lane.b32.xlu1 %v3235_v4, %s3522_s22  ;;  %3231 = vrot.lane.b32.xlu0 %v3235_v4, %s3520_s16  ;;  %s2820_s22 = sshll.u32 %s3601_s13, 4  ;;  %s3453_s16 = scalar_lea.vmem %s3452_s23, 32 }
  0x4d   : > { %s3840_s27 = scalar_lea.hbm %s3891_s9, %s2820_s22 }
  0x50   : > { %3246 = vrot.lane.b32.xlu1 %v3235_v4, %s3521_s17  ;;  %3241 = vrot.lane.b32.xlu0 %v3235_v4, %s3519_s21  ;;  %s338_s21 = sand.u32 1, %s3505_s10  }
  0x51   : > { %s2573_s29 = scalar_lea.sflag [#allocation4], %s338_s21 }
  0x54   : > { %3256 = vrot.lane.b32.xlu1 %v3235_v4, %s3524_s25  ;;  %3251 = vrot.lane.b32.xlu0 %v3235_v4, %s3525_s26  ;;  %s339_s25 = scalar_lea.vmem [#allocation5], %s338_s21 }
  0x55   : > { %s2585_s26 = sshll.u32 %s339_s25, 4  ;;  %s3842_s26 = int_to_ptr.vmem [resolvable:$true] %s2585_s26 }
  0x56   : > { %s3447_s13 = scalar_lea.vmem %s3842_s26, 16  ;;  %p3454_p2 = scmp.lt.s32.totalorder %s3842_s26, %s3452_s23 }
  0x57   : > { %p3448_p6 = scmp.ne.s32.totalorder %s3842_s26, %s3447_s13  ;;  %p3455_p3 = scmp.lt.s32.totalorder %s3453_s16, %s3447_s13 }
  0x58   : > { %3266 = vrot.lane.b32.xlu1 %v3265_v5, %s3526_s28  ;;  %3261 = vrot.lane.b32.xlu0 %v3235_v4, %s3527_s24 }
  0x59   : > { %p3449_p10 = pnand %p3448_p6, %p3902_p9  ;;  %p3456_p4 = por %p3455_p3, %p3454_p2 }
  0x5b   : > { %p3450_p12 = pneg %p3449_p10 }
  0x5c   : > { %467 = vperm.xlu0 %3270, %v464_v7  }
  0x5d   : > { %p3457_p7 = pnand %p3456_p4, %p3450_p12 }
  0xae   : > { %v381_v8 = vpop.permute.xlu1 %380  ;;  %v357_v9 = vpop.permute.xlu0 %356 }
  0xaf   : > { %v451_v10 = vpack.c.bf16 %v357_v9, %v348_v1 }
  0xb1   : > { %3036 = vmatpush3.bf16.msra.mxu1 %v451_v10 }
  0xb2   : > { %v3682_v11 = vpop.permute.xlu1 %392  ;;  %v369_v12 = vpop.permute.xlu0 %368  ;;  %3037 = vmatprep.subr.bf16.mxu1 %v3518_v0 }
  0xb3   : > { %v454_v13 = vpack.c.bf16 %v381_v8, %v369_v12 }
  0xb5   : > { %3038 = vmatpush3.bf16.msra.mxu1 %v454_v13  ;;  %v3272_v13 = vld [vmem:[#allocation2] sm:$0xff]  }
  0xb6   : > { %v3685_v14 = vpop.permute.xlu1 %416  ;;  %v3687_v15 = vpop.permute.xlu0 %404  ;;  %3039 = vmatprep.subr.bf16.mxu1 %v3518_v0 }
  0xb7   : > { %v457_v16 = vpack.c.bf16 %v3687_v15, %v3682_v11 }
  0xb9   : > { %3040 = vmatpush3.bf16.msra.mxu1 %v457_v16  ;;  %v3276_v16 = vld [vmem:[#allocation2 + $0x88] sm:$0xff]  }
  0xba   : > { %v3692_v17 = vpop.permute.xlu1 %440  ;;  %v3694_v18 = vpop.permute.xlu0 %428  ;;  %3041 = vmatprep.subr.bf16.mxu1 %v3518_v0 }
  0xbb   : > { %v463_v19 = vpack.c.bf16 %v3692_v17, %v3692_v17  ;;  %v460_v20 = vpack.c.bf16 %v3694_v18, %v3685_v14 }
  0xbd   : > { %3042 = vmatpush3.bf16.msra.mxu1 %v460_v20  ;;  %v482_v23 = vsel %vm474_vm1, %v463_v19, 0  ;;  %v3279_v19 = vld [vmem:[#allocation2 + $0xd0] sm:$0xff]   ;;  %v3281_v20 = vld [vmem:[#allocation2 + $0x58] sm:$0xff]  }
  0xbe   : > { %v3237_v21 = vpop.permute.xlu1 %3236  ;;  %v3232_v22 = vpop.permute.xlu0 %3231  ;;  %3043 = vmatprep.subr.bf16.mxu1 %v3518_v0 }
  0xbf   : > { %v3239_v24 = vunpack.i.h.bf16 %v3237_v21  ;;  %v3234_v25 = vunpack.i.h.bf16 %v3232_v22  ;;  %v3233_v26 = vunpack.i.l.bf16 %v3232_v22  ;;  %v3238_v27 = vunpack.i.l.bf16 %v3237_v21  ;;  %v3282_v21 = vld [vmem:[#allocation2 + $0x18] sm:$0xff]   ;;  %v3285_v22 = vld [vmem:[#allocation2 + $0x60] sm:$0xff]  }
  0xc1   : > { %3044 = vmatpush3.bf16.msra.mxu1 %v482_v23  ;;  %v360_v28 = vsel %vm358_vm2, %v3233_v26, %v357_v9  ;;  %v359_v30 = vsel %vm358_vm2, %v3234_v25, %v3233_v26  ;;  %v371_v39 = vsel %vm370_vm4, %v3239_v24, %v3238_v27  ;;  %v372_v41 = vsel %vm370_vm4, %v3238_v27, %v369_v12  ;;  %v3271_v12 = vld [vmem:[#allocation2 + $0x40] sm:$0xff]   ;;  %v3289_v24 = vld [vmem:[#allocation2 + $0x68] sm:$0xff]   ;;  %v3293_v26 = vld [vmem:[#allocation2 + $0x70] sm:$0xff]  }
  0xc2   : > { %v3247_v31 = vpop.permute.xlu1 %3246  ;;  %v3242_v32 = vpop.permute.xlu0 %3241  ;;  %v450_v33 = vpack.c.bf16 %v360_v28, %v3673_v3  ;;  %v449_v34 = vpack.c.bf16 %v359_v30, %v3669_v2  ;;  %3049 = vmatprep.subr.bf16.mxu1 %v3518_v0  ;;  %v3286_v23 = vld [vmem:[#allocation2 + $0x20] sm:$0xff]   ;;  %v3290_v25 = vld [vmem:[#allocation2 + $0x28] sm:$0xff]   ;;  %v3294_v27 = vld [vmem:[#allocation2 + $0x30] sm:$0xff]  }
  0xc3   : > { %v3249_v36 = vunpack.i.h.bf16 %v3247_v31  ;;  %v3244_v37 = vunpack.i.h.bf16 %v3242_v32  ;;  %v3243_v38 = vunpack.i.l.bf16 %v3242_v32  ;;  %v3248_v40 = vunpack.i.l.bf16 %v3247_v31  ;;  %v3297_v28 = vld [vmem:[#allocation2 + $0x78] sm:$0xff]   ;;  %v3301_v30 = vld [vmem:[#allocation2 + $0x160] sm:$0xff]  }
  0xc4   : > { %484 = vmatprep.subr.bf16.mxu0 %v450_v33  ;;  %3046 = vmatmul.mubr.msk.bf16.vlgmr.msra.gmra.mrb[0].mxu1 %vm470_vm3, %v3706_v29 }
  0xc5   : > { %485 = vmatpush1.bf16.msra.mxu0 %v449_v34  ;;  %v384_v42 = vsel %vm382_vm5, %v3243_v38, %v381_v8  ;;  %v383_v43 = vsel %vm382_vm5, %v3244_v37, %v3243_v38  ;;  %3050 = vmatpush3.bf16.msra.mxu1 %v3273_v35  ;;  %v395_v51 = vsel %vm394_vm6, %v3249_v36, %v3248_v40  ;;  %v3280_v38 = vld [vmem:[#allocation2 + $0x90] sm:$0xff]  }
  0xc6   : > { %v3257_v44 = vpop.permute.xlu1 %3256  ;;  %v3252_v45 = vpop.permute.xlu0 %3251  ;;  %v453_v46 = vpack.c.bf16 %v384_v42, %v372_v41  ;;  %v452_v47 = vpack.c.bf16 %v383_v43, %v371_v39  ;;  %3053 = vmatprep.mubr.msk.bf16.mxu1 %vm3523_vm0, %v3518_v0  ;;  %3051 = vmatprep.subr.bf16.mxu1 %v3518_v0  ;;  %v396_v53 = vsel %vm394_vm6, %v3248_v40, %v3682_v11  ;;  %v3283_v40 = vld [vmem:[#allocation2 + $0xd8] sm:$0xff]   ;;  %v3287_v42 = vld [vmem:[#allocation2 + $0xe0] sm:$0xff]  }
  0xc7   : > { %v3259_v48 = vunpack.i.h.bf16 %v3257_v44  ;;  %v3254_v49 = vunpack.i.h.bf16 %v3252_v45  ;;  %v3253_v50 = vunpack.i.l.bf16 %v3252_v45  ;;  %v3258_v52 = vunpack.i.l.bf16 %v3257_v44  ;;  %v3284_v41 = vld [vmem:[#allocation2 + $0x98] sm:$0xff]   ;;  %v3288_v43 = vld [vmem:[#allocation2 + $0xa0] sm:$0xff]   ;;  %v3291_v44 = vld [vmem:[#allocation2 + $0xe8] sm:$0xff]  }
  0xc8   : > { %486 = vmatprep.subr.bf16.mxu0 %v453_v46  ;;  %v3292_v45 = vld [vmem:[#allocation2 + $0xa8] sm:$0xff]   ;;  %v3295_v46 = vld [vmem:[#allocation2 + $0xf0] sm:$0xff]  }
  0xc9   : > { %487 = vmatpush1.bf16.msra.mxu0 %v452_v47  ;;  %v408_v54 = vsel %vm406_vm7, %v3253_v50, %v3687_v15  ;;  %v407_v55 = vsel %vm406_vm7, %v3254_v49, %v3253_v50  ;;  %v419_v60 = vsel %vm418_vm8, %v3259_v48, %v3258_v52  ;;  %v420_v2 = vsel %vm418_vm8, %v3258_v52, %v3685_v14  ;;  %v3274_v14 = vld [vmem:[#allocation2 + $0x48] sm:$0xff]   ;;  %v3296_v48 = vld [vmem:[#allocation2 + $0xb0] sm:$0xff]  }
  0xca   : > { %v3267_v56 = vpop.permute.xlu1 %3266  ;;  %v3262_v57 = vpop.permute.xlu0 %3261  ;;  %v456_v58 = vpack.c.bf16 %v408_v54, %v396_v53  ;;  %v455_v59 = vpack.c.bf16 %v407_v55, %v395_v51  ;;  %v3275_v15 = vld [vmem:[#allocation2 + $0x8] sm:$0xff]   ;;  %3052 = vmatpush3.bf16.msra.mxu1 %v3276_v16  ;;  %v3299_v51 = vld [vmem:[#allocation2 + $0xf8] sm:$0xff]   ;;  %v3317_v16 = vld [vmem:[#allocation2 + $0x1a0] sm:$0xff]  }
  0xcb   : > { %v3269_v61 = vunpack.i.h.bf16 %v3267_v56  ;;  %v3268_v62 = vunpack.i.l.bf16 %v3267_v56  ;;  %v3264_v63 = vunpack.i.h.bf16 %v3262_v57  ;;  %v3263_v1 = vunpack.i.l.bf16 %v3262_v57  ;;  %2854 = vmatprep.subr.bf16.mxu1 %v3279_v19  ;;  %v3300_v57 = vld [vmem:[#allocation2 + $0xb8] sm:$0xff]   ;;  %v3320_v19 = vld [vmem:[#allocation2 + $0x190] sm:$0xff]  }
  0xcc   : > { %488 = vmatprep.subr.bf16.mxu0 %v456_v58  ;;  %v3303_v58 = vld [vmem:[#allocation2 + $0x100] sm:$0xff]  }
  0xcd   : > { %v444_v3 = vsel %vm442_vm9, %v3269_v61, %v3692_v17  ;;  %489 = vmatpush1.bf16.msra.mxu0 %v455_v59  ;;  %v432_v4 = vsel %vm430_vm10, %v3263_v1, %v3694_v18  ;;  %v431_v5 = vsel %vm430_vm10, %v3264_v63, %v3263_v1  ;;  %v443_v6 = vsel %vm442_vm9, %v3268_v62, %v3269_v61  ;;  %v3277_v17 = vld [vmem:[#allocation2 + $0x50] sm:$0xff]   ;;  %v3305_v62 = vld [vmem:[#allocation2 + $0x168] sm:$0xff]  }
  0xce   : > { %v459_v7 = vpack.c.bf16 %v432_v4, %v420_v2  ;;  %v458_v8 = vpack.c.bf16 %v431_v5, %v419_v60  ;;  %v461_v9 = vpack.c.bf16 %v443_v6, %v443_v6  ;;  %v462_v10 = vpack.c.bf16 %v444_v3, %v444_v3  ;;  %v3278_v18 = vld [vmem:[#allocation2 + $0x10] sm:$0xff]   ;;  %v3302_v60 = vld [vmem:[#allocation2 + $0x120] sm:$0xff]   ;;  %v3307_v3 = vld [vmem:[#allocation2 + $0x108] sm:$0xff]  }
  0xcf   : > { %v3304_v2 = vld [vmem:[#allocation2 + $0xc0] sm:$0xff]   ;;  %v3306_v4 = vld [vmem:[#allocation2 + $0x128] sm:$0xff]   ;;  %v3309_v5 = vld [vmem:[#allocation2 + $0x170] sm:$0xff]  }
  0xd0   : > { %490 = vmatprep.subr.bf16.mxu0 %v459_v7  ;;  %v476_v11 = vsel %vm474_vm1, %v461_v9, 0  ;;  %v3308_v6 = vld [vmem:[#allocation2 + $0xc8] sm:$0xff]   ;;  %v3310_v7 = vld [vmem:[#allocation2 + $0x130] sm:$0xff]  }
  0xd1   : > { %491 = vmatpush1.bf16.msra.mxu0 %v458_v8  ;;  %v3312_v8 = vld [vmem:[#allocation2 + $0x178] sm:$0xff]   ;;  %v3311_v9 = vld [vmem:[#allocation2 + $0x110] sm:$0xff]  }
  0xd2   : > { %2659 = vmatprep.subr.msk.bf16.mxu0 %vm474_vm1, %v462_v10 }
  0xd5   : > { %493 = vmatpush1.bf16.msra.mxu0 %v476_v11  ;;  %v3313_v11 = vld [vmem:[#allocation2 + $0x138] sm:$0xff]  }
  0xd6   : > { %2829 = vmatprep.subr.bf16.mxu0 %v3271_v12  ;;  %v3315_v12 = vld [vmem:[#allocation2 + $0x180] sm:$0xff]  }
  0xd8   : > { %2660 = vmatmul.mubr.msk.bf16.vlgmr.msra.gmra.mrb[0].mxu0 %vm470_vm3, %v3706_v29  ;;  %v3298_v29 = vld [vmem:[#allocation2 + $0x38] sm:$0xff]  }
  0xd9   : > { %2830 = vmatpush3.bf16.msra.mxu0 %v3272_v13  ;;  %v3314_v13 = vld [vmem:[#allocation2 + $0x118] sm:$0xff]  }
  0xda   : > { %2831 = vmatprep.subr.bf16.mxu0 %v3274_v14  ;;  %v3316_v14 = vld [vmem:[#allocation2 + $0x140] sm:$0xff]  }
  0xdb   : > { %v468_v31 = vpop.permute.xlu0 %467 }
  0xdd   : > { %2832 = vmatpush3.bf16.msra.mxu0 %v3275_v15  ;;  %v3318_v15 = vld [vmem:[#allocation2 + $0x188] sm:$0xff]  }
  0xde   : > { %2833 = vmatprep.subr.bf16.mxu0 %v3277_v17 }
  0xe1   : > { %2834 = vmatpush3.bf16.msra.mxu0 %v3278_v18  ;;  %v3319_v18 = vld [vmem:[#allocation2 + $0x148] sm:$0xff]  }
  0xe2   : > { %2835 = vmatprep.subr.bf16.mxu0 %v3281_v20  ;;  %v3322_v20 = vld [vmem:[#allocation2 + $0x1a8] sm:$0xff]  }
  0xe5   : > { %2836 = vmatpush3.bf16.msra.mxu0 %v3282_v21  ;;  %v3325_v21 = vld [vmem:[#allocation2 + $0x1f0] sm:$0xff]  }
  0xe6   : > { %2837 = vmatprep.subr.bf16.mxu0 %v3285_v22  ;;  %v3321_v22 = vld [vmem:[#allocation2 + $0x150] sm:$0xff]  }
  0xe9   : > { %2838 = vmatpush3.bf16.msra.mxu0 %v3286_v23  ;;  %v3323_v23 = vld [vmem:[#allocation2 + $0x198] sm:$0xff]  }
  0xea   : > { %2839 = vmatprep.subr.bf16.mxu0 %v3289_v24  ;;  %v3324_v24 = vld [vmem:[#allocation2 + $0x158] sm:$0xff]  }
  0xed   : > { %2840 = vmatpush3.bf16.msra.mxu0 %v3290_v25  ;;  %v3327_v25 = vld [vmem:[#allocation2 + $0x280] sm:$0xff]  }
  0xee   : > { %2841 = vmatprep.subr.bf16.mxu0 %v3293_v26  ;;  %v3326_v26 = vld [vmem:[#allocation2 + $0x1b0] sm:$0xff]  }
  0xf1   : > { %2842 = vmatpush3.bf16.msra.mxu0 %v3294_v27 }
  0xf2   : > { %2843 = vmatprep.subr.bf16.mxu0 %v3297_v28  ;;  %v3328_v28 = vld [vmem:[#allocation2 + $0x1f8] sm:$0xff]  }
  0xf5   : > { %2844 = vmatpush3.bf16.msra.mxu0 %v3298_v29 }
  0xf6   : > { %2879 = vmatprep.subr.bf16.mxu0 %v3301_v30  ;;  %v3329_v30 = vld [vmem:[#allocation2 + $0x240] sm:$0xff]  }
 0x197   : > { %v559_v32 = vpop.f32.mrb[0].mxu1 }
 0x198   : > { %v560_v33 = vadd.f32 %v559_v32, %v468_v31  ;;  %v3047_v34 = vpop.f32.mrb[1].mxu1  ;;  %v3331_v32 = vld [vmem:[#allocation2 + $0x288] sm:$0xff]  }
 0x199   : > { %v562_v35 = vpop.f32.mrb[2].mxu1  ;;  %v3330_v34 = vld [vmem:[#allocation2 + $0x1b8] sm:$0xff]  }
 0x19a   : > { %v567_v36 = vmax.f32 %v560_v33, 0.0  ;;  %v3048_v37 = vpop.f32.mrb[3].mxu1  ;;  %v3332_v35 = vld [vmem:[#allocation2 + $0x200] sm:$0xff]  }
 0x19b   : > { %v3335_v37 = vld [vmem:[#allocation2 + $0x290] sm:$0xff]  }
 0x19c   : > { %v3729_v39 = vpack.c.bf16 %v567_v36, %v567_v36  ;;  %v3333_v36 = vld [vmem:[#allocation2 + $0x248] sm:$0xff]  }
 0x19e   : > { %3054 = vmatmul.mubr.msk.bf16.vlgmr.msra.gmra.mrb[4].mxu1 %vm716_vm11, %v3729_v39  ;;  %v3753_v17 = vshrl.u32 %v3729_v39, 16  ;;  %v1082_v27 = vrot.slane %v3729_v39, 1 }
 0x19f   : > { %2855 = vmatpush3.bf16.msra.mxu1 %v3280_v38  ;;  %v3334_v38 = vld [vmem:[#allocation2 + $0x1c0] sm:$0xff]  }
 0x1a0   : > { %2856 = vmatprep.subr.bf16.mxu1 %v3283_v40  ;;  %v3336_v40 = vld [vmem:[#allocation2 + $0x208] sm:$0xff]  }
 0x1a3   : > { %2857 = vmatpush3.bf16.msra.mxu1 %v3284_v41  ;;  %v3337_v41 = vld [vmem:[#allocation2 + $0x250] sm:$0xff]  }
 0x1a4   : > { %2858 = vmatprep.subr.bf16.mxu1 %v3287_v42  ;;  %v3339_v42 = vld [vmem:[#allocation2 + $0x298] sm:$0xff]  }
 0x1a7   : > { %2859 = vmatpush3.bf16.msra.mxu1 %v3288_v43  ;;  %v3338_v43 = vld [vmem:[#allocation2 + $0x1c8] sm:$0xff]  }
 0x1a8   : > { %2860 = vmatprep.subr.bf16.mxu1 %v3291_v44  ;;  %v3340_v44 = vld [vmem:[#allocation2 + $0x210] sm:$0xff]  }
 0x1ab   : > { %2861 = vmatpush3.bf16.msra.mxu1 %v3292_v45  ;;  %v518_v47 = vpop.f32.mrb[0].mxu0  ;;  %v3341_v45 = vld [vmem:[#allocation2 + $0x258] sm:$0xff]  }
 0x1ac   : > { %v519_v49 = vadd.f32 %v518_v47, %v468_v31  ;;  %v520_v50 = vpop.f32.mrb[1].mxu0  ;;  %2862 = vmatprep.subr.bf16.mxu1 %v3295_v46  ;;  %v3343_v46 = vld [vmem:[#allocation2 + $0x2a0] sm:$0xff]   ;;  %v3342_v47 = vld [vmem:[#allocation2 + $0x1d0] sm:$0xff]  }
 0x1ad   : > { %v521_v52 = vadd.f32 %v520_v50, %v468_v31  ;;  %v522_v53 = vpop.f32.mrb[2].mxu0  ;;  %v3347_v50 = vld [vmem:[#allocation2 + $0x2a8] sm:$0xff]  }
 0x1ae   : > { %v565_v54 = vmax.f32 %v519_v49, 0.0  ;;  %v523_v55 = vpop.f32.mrb[3].mxu0  ;;  %v3345_v49 = vld [vmem:[#allocation2 + $0x260] sm:$0xff]   ;;  %v3349_v53 = vld [vmem:[#allocation2 + $0x268] sm:$0xff]  }
 0x1af   : > { %v566_v56 = vmax.f32 %v521_v52, 0.0  ;;  %2863 = vmatpush3.bf16.msra.mxu1 %v3296_v48  ;;  %v3344_v48 = vld [vmem:[#allocation2 + $0x218] sm:$0xff]   ;;  %v3348_v52 = vld [vmem:[#allocation2 + $0x220] sm:$0xff]  }
 0x1b0   : > { %2864 = vmatprep.subr.bf16.mxu1 %v3299_v51  ;;  %v3735_v61 = vpack.c.bf16 %v565_v54, %v565_v54  ;;  %v3346_v51 = vld [vmem:[#allocation2 + $0x1d8] sm:$0xff]   ;;  %v3351_v54 = vld [vmem:[#allocation2 + $0x2b0] sm:$0xff]   ;;  %v3350_v55 = vld [vmem:[#allocation2 + $0x1e0] sm:$0xff]  }
 0x1b1   : > { %v3733_v59 = vpack.c.bf16 %v566_v56, %v566_v56  ;;  %v3352_v56 = vld [vmem:[#allocation2 + $0x228] sm:$0xff]  }
 0x1b2   : > { %v3745_v10 = vshrl.u32 %v3735_v61, 16  ;;  %v1080_v31 = vrot.slane %v3735_v61, 1 }
 0x1b3   : > { %2865 = vmatpush3.bf16.msra.mxu1 %v3300_v57  ;;  %752 = vmatprep.mubr.bf16.mxu0 %v3733_v59  ;;  %v3739_v63 = vshrl.u32 %v3733_v59, 16  ;;  %v1081_v1 = vrot.slane %v3733_v59, 1  ;;  %v1549_v33 = vrot.slane %v3733_v59, 2  ;;  %v3353_v57 = vld [vmem:[#allocation2 + $0x270] sm:$0xff]  }
 0x1b4   : > { %753 = vmatmul.mubr.bf16.vlgmr.msra.gmra.mrb[4].mxu0 %v3735_v61  ;;  %2866 = vmatprep.subr.bf16.mxu1 %v3303_v58  ;;  %v3355_v58 = vld [vmem:[#allocation2 + $0x2b8] sm:$0xff]  }
 0x1b5   : > { %2880 = vmatpush3.bf16.msra.mxu0 %v3302_v60  ;;  %991 = vmatprep.mubr.bf16.mxu1 %v3739_v63  ;;  %v1315_v29 = vrot.slane %v3739_v63, 1  ;;  %v3354_v60 = vld [vmem:[#allocation2 + $0x1e8] sm:$0xff]  }
 0x1b6   : > { %1228 = vmatprep.mubr.bf16.mxu0 %v1081_v1  ;;  %2881 = vmatprep.subr.bf16.mxu0 %v3305_v62  ;;  %v3356_v62 = vld [vmem:[#allocation2 + $0x278] sm:$0xff]   ;;  %v3358_v1 = vld [vmem:[#allocation2 + $0x310] sm:$0xff]  }
 0x1b7   : > { %2867 = vmatpush3.bf16.msra.mxu1 %v3304_v2  ;;  %v3357_v2 = vld [vmem:[#allocation2 + $0x230] sm:$0xff]  }
 0x1b8   : > { %2868 = vmatprep.subr.bf16.mxu1 %v3307_v3  ;;  %v1314_v3 = vrot.slane %v3745_v10, 1 }
 0x1b9   : > { %2882 = vmatpush3.bf16.msra.mxu0 %v3306_v4  ;;  %v3359_v4 = vld [vmem:[#allocation2 + $0x2d0] sm:$0xff]  }
 0x1ba   : > { %2883 = vmatprep.subr.bf16.mxu0 %v3309_v5  ;;  %v1548_v5 = vrot.slane %v3735_v61, 2 }
 0x1bb   : > { %2869 = vmatpush3.bf16.msra.mxu1 %v3308_v6  ;;  %v3361_v6 = vld [vmem:[#allocation2 + $0x318] sm:$0xff]  }
 0x1bc   : > { %3057 = vmatprep.subr.bf16.mxu1 %v3518_v0 }
 0x1bd   : > { %2884 = vmatpush3.bf16.msra.mxu0 %v3310_v7  ;;  %v1783_v7 = vrot.slane %v3739_v63, 2 }
 0x1be   : > { %992 = vmatmul.mubr.bf16.vlgmr.msra.gmra.mrb[8].mxu1 %v3745_v10  ;;  %2885 = vmatprep.subr.bf16.mxu0 %v3312_v8  ;;  %v3360_v8 = vld [vmem:[#allocation2 + $0x238] sm:$0xff]  }
 0x1bf   : > { %3058 = vmatpush3.bf16.msra.mxu1 %v3311_v9  ;;  %3061 = vmatprep.mubr.msk.bf16.mxu1 %vm3523_vm0, %v3518_v0  ;;  %v3362_v9 = vld [vmem:[#allocation2 + $0x2d8] sm:$0xff]  }
 0x1c0   : > { %3059 = vmatprep.subr.bf16.mxu1 %v3518_v0 }
 0x1c1   : > { %2886 = vmatpush3.bf16.msra.mxu0 %v3313_v11  ;;  %v3364_v11 = vld [vmem:[#allocation2 + $0x320] sm:$0xff]  }
 0x1c2   : > { %2887 = vmatprep.subr.bf16.mxu0 %v3315_v12  ;;  %v3363_v12 = vld [vmem:[#allocation2 + $0x2c0] sm:$0xff]  }
 0x1c3   : > { %3060 = vmatpush3.bf16.msra.mxu1 %v3314_v13  ;;  %v1316_v13 = vrot.slane %v3753_v17, 1 }
 0x1c4   : > { %3065 = vmatprep.subr.bf16.mxu1 %v3518_v0 }
 0x1c5   : > { %2888 = vmatpush3.bf16.msra.mxu0 %v3316_v14  ;;  %v3365_v14 = vld [vmem:[#allocation2 + $0x2e0] sm:$0xff]  }
 0x1c6   : > { %3062 = vmatmul.mubr.msk.bf16.vlgmr.msra.gmra.mrb[4].mxu1 %vm716_vm11, %v3753_v17  ;;  %2889 = vmatprep.subr.bf16.mxu0 %v3318_v15  ;;  %v3367_v15 = vld [vmem:[#allocation2 + $0x328] sm:$0xff]  }
 0x1c7   : > { %3066 = vmatpush3.bf16.msra.mxu1 %v3317_v16  ;;  %3069 = vmatprep.mubr.msk.bf16.mxu1 %vm3523_vm0, %v3518_v0  ;;  %v3366_v16 = vld [vmem:[#allocation2 + $0x2c8] sm:$0xff]  }
 0x1c8   : > { %3067 = vmatprep.subr.bf16.mxu1 %v3518_v0 }
 0x1c9   : > { %2890 = vmatpush3.bf16.msra.mxu0 %v3319_v18  ;;  %v3368_v18 = vld [vmem:[#allocation2 + $0x2e8] sm:$0xff]  }
 0x1ca   : > { %2891 = vmatprep.subr.bf16.mxu0 %v3320_v19  ;;  %v3369_v19 = vld [vmem:[#allocation2 + $0x330] sm:$0xff]  }
 0x1cb   : > { %3068 = vmatpush3.bf16.msra.mxu1 %v3322_v20  ;;  %v3370_v20 = vld [vmem:[#allocation2 + $0x2f0] sm:$0xff]  }
 0x1cc   : > { %2904 = vmatprep.subr.bf16.mxu1 %v3325_v21  ;;  %v3372_v21 = vld [vmem:[#allocation2 + $0x338] sm:$0xff]  }
 0x1cd   : > { %2892 = vmatpush3.bf16.msra.mxu0 %v3321_v22  ;;  %v3371_v22 = vld [vmem:[#allocation2 + $0x350] sm:$0xff]  }
 0x1ce   : > { %2893 = vmatprep.subr.bf16.mxu0 %v3323_v23  ;;  %v1550_v23 = vrot.slane %v3729_v39, 2 }
 0x1d1   : > { %2894 = vmatpush3.bf16.msra.mxu0 %v3324_v24  ;;  %v3373_v24 = vld [vmem:[#allocation2 + $0x2f8] sm:$0xff]  }
 0x1d2   : > { %3070 = vmatmul.mubr.msk.bf16.vlgmr.msra.gmra.mrb[4].mxu1 %vm716_vm11, %v1082_v27  ;;  %2929 = vmatprep.subr.bf16.mxu0 %v3327_v25  ;;  %v3374_v25 = vld [vmem:[#allocation2 + $0x340] sm:$0xff]  }
 0x1d3   : > { %2905 = vmatpush3.bf16.msra.mxu1 %v3326_v26  ;;  %1462 = vmatprep.mubr.bf16.mxu1 %v1315_v29  ;;  %v3375_v26 = vld [vmem:[#allocation2 + $0x358] sm:$0xff]   ;;  %v3378_v27 = vld [vmem:[#allocation2 + $0x3a0] sm:$0xff]   ;;  %v3377_v29 = vld [vmem:[#allocation2 + $0x348] sm:$0xff]  }
 0x1d4   : > { %1229 = vmatmul.mubr.bf16.vlgmr.msra.gmra.mrb[8].mxu0 %v1080_v31  ;;  %2906 = vmatprep.subr.bf16.mxu1 %v3328_v28  ;;  %v3376_v28 = vld [vmem:[#allocation2 + $0x300] sm:$0xff]   ;;  %v3382_v31 = vld [vmem:[#allocation2 + $0x430] sm:$0xff]  }
 0x1d5   : > { %2930 = vmatpush3.bf16.msra.mxu0 %v3329_v30  ;;  %1696 = vmatprep.mubr.bf16.mxu0 %v1549_v33  ;;  %v3379_v30 = vld [vmem:[#allocation2 + $0x308] sm:$0xff]   ;;  %v1784_v33 = vrot.slane %v3753_v17, 2 }
 0x1d6   : > { %2931 = vmatprep.subr.bf16.mxu0 %v3331_v32  ;;  %v3380_v32 = vld [vmem:[#allocation2 + $0x360] sm:$0xff]  }
 0x1d7   : > { %2907 = vmatpush3.bf16.msra.mxu1 %v3330_v34  ;;  %v3381_v34 = vld [vmem:[#allocation2 + $0x3a8] sm:$0xff]  }
 0x1d8   : > { %2908 = vmatprep.subr.bf16.mxu1 %v3332_v35  ;;  %v2017_v35 = vrot.slane %v3733_v59, 3  ;;  %v3390_v59 = vld [vmem:[#allocation2 + $0x440] sm:$0xff]  }
 0x1d9   : > { %2932 = vmatpush3.bf16.msra.mxu0 %v3333_v36  ;;  %v3384_v36 = vld [vmem:[#allocation2 + $0x3f0] sm:$0xff]  }
 0x1da   : > { %2933 = vmatprep.subr.bf16.mxu0 %v3335_v37  ;;  %v1782_v37 = vrot.slane %v3745_v10, 2 }
 0x1db   : > { %2909 = vmatpush3.bf16.msra.mxu1 %v3334_v38  ;;  %v3386_v38 = vld [vmem:[#allocation2 + $0x438] sm:$0xff]  }
 0x1dc   : > { %2910 = vmatprep.subr.bf16.mxu1 %v3336_v40  ;;  %v3383_v40 = vld [vmem:[#allocation2 + $0x368] sm:$0xff]  }
 0x1dd   : > { %2934 = vmatpush3.bf16.msra.mxu0 %v3337_v41  ;;  %v2251_v41 = vrot.slane %v3739_v63, 3  ;;  %v3393_v63 = vld [vmem:[#allocation2 + $0x3c0] sm:$0xff]  }
 0x1de   : > { %2935 = vmatprep.subr.bf16.mxu0 %v3339_v42  ;;  %v3385_v42 = vld [vmem:[#allocation2 + $0x3b0] sm:$0xff]  }
 0x1df   : > { %2911 = vmatpush3.bf16.msra.mxu1 %v3338_v43  ;;  %v3388_v43 = vld [vmem:[#allocation2 + $0x3f8] sm:$0xff]  }
 0x1e0   : > { %2912 = vmatprep.subr.bf16.mxu1 %v3340_v44  ;;  %v3387_v44 = vld [vmem:[#allocation2 + $0x370] sm:$0xff]  }
 0x1e1   : > { %2936 = vmatpush3.bf16.msra.mxu0 %v3341_v45  ;;  %v3389_v45 = vld [vmem:[#allocation2 + $0x3b8] sm:$0xff]  }
 0x1e2   : > { %2937 = vmatprep.subr.bf16.mxu0 %v3343_v46  ;;  %v3392_v46 = vld [vmem:[#allocation2 + $0x400] sm:$0xff]  }
 0x1e3   : > { %2913 = vmatpush3.bf16.msra.mxu1 %v3342_v47  ;;  %v3394_v47 = vld [vmem:[#allocation2 + $0x448] sm:$0xff]  }
 0x1e4   : > { %2914 = vmatprep.subr.bf16.mxu1 %v3344_v48  ;;  %v3391_v48 = vld [vmem:[#allocation2 + $0x378] sm:$0xff]  }
 0x1e5   : > { %2938 = vmatpush3.bf16.msra.mxu0 %v3345_v49  ;;  %v3396_v49 = vld [vmem:[#allocation2 + $0x408] sm:$0xff]  }
 0x1e6   : > { %2939 = vmatprep.subr.bf16.mxu0 %v3347_v50  ;;  %v3398_v50 = vld [vmem:[#allocation2 + $0x450] sm:$0xff]  }
 0x1e7   : > { %2915 = vmatpush3.bf16.msra.mxu1 %v3346_v51  ;;  %v3395_v51 = vld [vmem:[#allocation2 + $0x380] sm:$0xff]  }
 0x1e8   : > { %2916 = vmatprep.subr.bf16.mxu1 %v3348_v52  ;;  %v3397_v52 = vld [vmem:[#allocation2 + $0x3c8] sm:$0xff]  }
 0x1e9   : > { %2940 = vmatpush3.bf16.msra.mxu0 %v3349_v53  ;;  %v3400_v53 = vld [vmem:[#allocation2 + $0x410] sm:$0xff]  }
 0x1ea   : > { %2941 = vmatprep.subr.bf16.mxu0 %v3351_v54  ;;  %v3402_v54 = vld [vmem:[#allocation2 + $0x458] sm:$0xff]  }
 0x1eb   : > { %2917 = vmatpush3.bf16.msra.mxu1 %v3350_v55  ;;  %v3399_v55 = vld [vmem:[#allocation2 + $0x388] sm:$0xff]  }
 0x1ec   : > { %2918 = vmatprep.subr.bf16.mxu1 %v3352_v56  ;;  %v3401_v56 = vld [vmem:[#allocation2 + $0x3d0] sm:$0xff]  }
 0x1ed   : > { %2942 = vmatpush3.bf16.msra.mxu0 %v3353_v57  ;;  %v3404_v57 = vld [vmem:[#allocation2 + $0x418] sm:$0xff]  }
 0x1ee   : > { %2943 = vmatprep.subr.bf16.mxu0 %v3355_v58  ;;  %v3406_v58 = vld [vmem:[#allocation2 + $0x460] sm:$0xff]  }
 0x1ef   : > { %2919 = vmatpush3.bf16.msra.mxu1 %v3354_v60  ;;  %v3403_v60 = vld [vmem:[#allocation2 + $0x390] sm:$0xff]  }
 0x1f0   : > { %3073 = vmatprep.subr.bf16.mxu1 %v3518_v0 }
 0x1f1   : > { %2944 = vmatpush3.bf16.msra.mxu0 %v3356_v62  ;;  %v3405_v62 = vld [vmem:[#allocation2 + $0x3d8] sm:$0xff]  }
 0x1f2   : > { %1463 = vmatmul.mubr.bf16.vlgmr.msra.gmra.mrb[12].mxu1 %v1314_v3  ;;  %2954 = vmatprep.subr.bf16.mxu0 %v3358_v1  ;;  %v3408_v1 = vld [vmem:[#allocation2 + $0x420] sm:$0xff]   ;;  %v3407_v3 = vld [vmem:[#allocation2 + $0x398] sm:$0xff]  }
 0x1f3   : > { %3074 = vmatpush3.bf16.msra.mxu1 %v3357_v2  ;;  %3077 = vmatprep.mubr.msk.bf16.mxu1 %vm3523_vm0, %v3518_v0  ;;  %v3409_v2 = vld [vmem:[#allocation2 + $0x468] sm:$0xff]  }
 0x1f4   : > { %1697 = vmatmul.mubr.bf16.vlgmr.msra.gmra.mrb[12].mxu0 %v1548_v5  ;;  %3075 = vmatprep.subr.bf16.mxu1 %v3518_v0  ;;  %v3410_v5 = vld [vmem:[#allocation2 + $0x3e0] sm:$0xff]  }
 0x1f5   : > { %2955 = vmatpush3.bf16.msra.mxu0 %v3359_v4  ;;  %1930 = vmatprep.mubr.bf16.mxu0 %v1783_v7  ;;  %v3411_v4 = vld [vmem:[#allocation2 + $0x428] sm:$0xff]   ;;  %v2250_v7 = vrot.slane %v3745_v10, 3  ;;  %v3414_v10 = vld [vmem:[#allocation2 + $0x478] sm:$0xff]  }
 0x1f6   : > { %2956 = vmatprep.subr.bf16.mxu0 %v3361_v6  ;;  %v2016_v6 = vrot.slane %v3735_v61, 3  ;;  %v3413_v61 = vld [vmem:[#allocation2 + $0x470] sm:$0xff]  }
 0x1f7   : > { %3076 = vmatpush3.bf16.msra.mxu1 %v3360_v8  ;;  %v3412_v8 = vld [vmem:[#allocation2 + $0x3e8] sm:$0xff]  }
 0x1f8   : > { %3081 = vmatprep.subr.bf16.mxu1 %v3518_v0 }
 0x1f9   : > { %2957 = vmatpush3.bf16.msra.mxu0 %v3362_v9  ;;  %v2018_v9 = vrot.slane %v3729_v39, 3 }
 0x1fa   : > { %3078 = vmatmul.mubr.msk.bf16.vlgmr.msra.gmra.mrb[4].mxu1 %vm716_vm11, %v1316_v13  ;;  %2958 = vmatprep.subr.bf16.mxu0 %v3364_v11  ;;  %v2252_v11 = vrot.slane %v3753_v17, 3 }
 0x1fb   : > { %3082 = vmatpush3.bf16.msra.mxu1 %v3363_v12  ;;  %3085 = vmatprep.mubr.msk.bf16.mxu1 %vm3523_vm0, %v3518_v0 }
 0x1fc   : > { %3083 = vmatprep.subr.bf16.mxu1 %v3518_v0 }
 0x1fd   : > { %2959 = vmatpush3.bf16.msra.mxu0 %v3365_v14 }
 0x1fe   : > { %2960 = vmatprep.subr.bf16.mxu0 %v3367_v15 }
 0x1ff   : > { %3084 = vmatpush3.bf16.msra.mxu1 %v3366_v16  ;;  %v568_v16 = vld [vmem:[%s3886_s4] sm:$0x1] }
 0x200   : > { %3089 = vmatprep.subr.bf16.mxu1 %v3518_v0 }
 0x201   : > { %2961 = vmatpush3.bf16.msra.mxu0 %v3368_v18 }
 0x202   : > { %2962 = vmatprep.subr.bf16.mxu0 %v3369_v19 }
 0x205   : > { %2963 = vmatpush3.bf16.msra.mxu0 %v3370_v20 }
 0x206   : > { %3086 = vmatmul.mubr.msk.bf16.vlgmr.msra.gmra.mrb[4].mxu1 %vm716_vm11, %v1550_v23  ;;  %2964 = vmatprep.subr.bf16.mxu0 %v3372_v21 }
 0x207   : > { %3090 = vmatpush3.bf16.msra.mxu1 %v3371_v22  ;;  %3093 = vmatprep.mubr.msk.bf16.mxu1 %vm3523_vm0, %v3518_v0 }
 0x208   : > { %3091 = vmatprep.subr.bf16.mxu1 %v3518_v0 }
 0x209   : > { %2965 = vmatpush3.bf16.msra.mxu0 %v3373_v24  ;;  %v3415_v24 = vld [vmem:[%s3887_s5] sm:$0xff]  }
 0x20a   : > { %2966 = vmatprep.subr.bf16.mxu0 %v3374_v25  ;;  %v3416_v25 = vld [vmem:[%s3887_s5 + $0x8] sm:$0xff]  }
 0x20b   : > { %3092 = vmatpush3.bf16.msra.mxu1 %v3375_v26 }
 0x20c   : > { %2979 = vmatprep.subr.bf16.mxu1 %v3378_v27 }
 0x20d   : > { %2967 = vmatpush3.bf16.msra.mxu0 %v3376_v28 }
 0x20e   : > { %2968 = vmatprep.subr.bf16.mxu0 %v3377_v29 }
 0x211   : > { %2969 = vmatpush3.bf16.msra.mxu0 %v3379_v30 }
 0x212   : > { %3094 = vmatmul.mubr.msk.bf16.vlgmr.msra.gmra.mrb[4].mxu1 %vm716_vm11, %v1784_v33  ;;  %3004 = vmatprep.subr.bf16.mxu0 %v3382_v31 }
 0x213   : > { %2980 = vmatpush3.bf16.msra.mxu1 %v3380_v32  ;;  %2164 = vmatprep.mubr.bf16.mxu1 %v2017_v35 }
 0x214   : > { %1931 = vmatmul.mubr.bf16.vlgmr.msra.gmra.mrb[16].mxu0 %v1782_v37  ;;  %2981 = vmatprep.subr.bf16.mxu1 %v3381_v34 }
 0x215   : > { %3005 = vmatpush3.bf16.msra.mxu0 %v3384_v36  ;;  %2398 = vmatprep.mubr.bf16.mxu0 %v2251_v41 }
 0x216   : > { %3006 = vmatprep.subr.bf16.mxu0 %v3386_v38 }
 0x217   : > { %2982 = vmatpush3.bf16.msra.mxu1 %v3383_v40 }
 0x218   : > { %2983 = vmatprep.subr.bf16.mxu1 %v3385_v42 }
 0x219   : > { %3007 = vmatpush3.bf16.msra.mxu0 %v3388_v43 }
 0x21a   : > { %3008 = vmatprep.subr.bf16.mxu0 %v3390_v59 }
 0x21b   : > { %2984 = vmatpush3.bf16.msra.mxu1 %v3387_v44 }
 0x21c   : > { %2985 = vmatprep.subr.bf16.mxu1 %v3389_v45 }
 0x21d   : > { %3009 = vmatpush3.bf16.msra.mxu0 %v3392_v46 }
 0x21e   : > { %3010 = vmatprep.subr.bf16.mxu0 %v3394_v47 }
 0x21f   : > { %2986 = vmatpush3.bf16.msra.mxu1 %v3391_v48 }
 0x220   : > { %2987 = vmatprep.subr.bf16.mxu1 %v3393_v63 }
 0x221   : > { %3011 = vmatpush3.bf16.msra.mxu0 %v3396_v49 }
 0x222   : > { %3012 = vmatprep.subr.bf16.mxu0 %v3398_v50 }
 0x223   : > { %2988 = vmatpush3.bf16.msra.mxu1 %v3395_v51 }
 0x224   : > { %2989 = vmatprep.subr.bf16.mxu1 %v3397_v52 }
 0x225   : > { %3013 = vmatpush3.bf16.msra.mxu0 %v3400_v53 }
 0x226   : > { %3014 = vmatprep.subr.bf16.mxu0 %v3402_v54 }
 0x227   : > { %2990 = vmatpush3.bf16.msra.mxu1 %v3399_v55 }
 0x228   : > { %2991 = vmatprep.subr.bf16.mxu1 %v3401_v56 }
 0x229   : > { %3015 = vmatpush3.bf16.msra.mxu0 %v3404_v57 }
 0x22a   : > { %3016 = vmatprep.subr.bf16.mxu0 %v3406_v58 }
 0x22b   : > { %2992 = vmatpush3.bf16.msra.mxu1 %v3403_v60 }
 0x22c   : > { %2993 = vmatprep.subr.bf16.mxu1 %v3405_v62 }
 0x22d   : > { %3017 = vmatpush3.bf16.msra.mxu0 %v3408_v1 }
 0x22e   : > { %3018 = vmatprep.subr.bf16.mxu0 %v3409_v2 }
 0x22f   : > { %2994 = vmatpush3.bf16.msra.mxu1 %v3407_v3 }
 0x230   : > { %3097 = vmatprep.subr.bf16.mxu1 %v3518_v0 }
 0x231   : > { %3019 = vmatpush3.bf16.msra.mxu0 %v3411_v4 }
 0x232   : > { %2165 = vmatmul.mubr.bf16.vlgmr.msra.gmra.mrb[16].mxu1 %v2016_v6  ;;  %3113 = vmatprep.subr.bf16.mxu0 %v3518_v0 }
 0x233   : > { %3098 = vmatpush3.bf16.msra.mxu1 %v3410_v5  ;;  %3101 = vmatprep.mubr.msk.bf16.mxu1 %vm3523_vm0, %v3518_v0 }
 0x234   : > { %3099 = vmatprep.subr.bf16.mxu1 %v3518_v0  ;;  %2399 = vmatmul.mubr.bf16.vlgmr.msra.gmra.mrb[20].mxu0 %v2250_v7 }
 0x235   : > { %3117 = vmatprep.mubr.msk.bf16.mxu0 %vm3523_vm0, %v3518_v0  ;;  %3114 = vmatpush3.bf16.msra.mxu0 %v3415_v24 }
 0x236   : > { %3115 = vmatprep.subr.bf16.mxu0 %v3518_v0 }
 0x237   : > { %3100 = vmatpush3.bf16.msra.mxu1 %v3412_v8  ;;  %v3417_v8 = vld [vmem:[%s3889_s7] sm:$0xff]  }
 0x238   : > { %3105 = vmatprep.subr.bf16.mxu1 %v3518_v0 }
 0x239   : > { %3116 = vmatpush3.bf16.msra.mxu0 %v3416_v25 }
 0x23a   : > { %3102 = vmatmul.mubr.msk.bf16.vlgmr.msra.gmra.mrb[4].mxu1 %vm716_vm11, %v2018_v9  ;;  %v2453_v9 = vld [vmem:[%s3888_s6] sm:$0x1] }
 0x23b   : > { %3106 = vmatpush3.bf16.msra.mxu1 %v3413_v61  ;;  %3109 = vmatprep.mubr.msk.bf16.mxu1 %vm3523_vm0, %v3518_v0  ;;  %v3418_v61 = vld [vmem:[%s3889_s7 + $0x8] sm:$0xff]  }
 0x23c   : > { %3107 = vmatprep.subr.bf16.mxu1 %v3518_v0 }
 0x23f   : > { %3108 = vmatpush3.bf16.msra.mxu1 %v3414_v10 }
 0x240   : > { %3121 = vmatprep.subr.bf16.mxu1 %v3518_v0 }
 0x246   : > { %3110 = vmatmul.mubr.msk.bf16.vlgmr.msra.gmra.mrb[4].mxu1 %vm716_vm11, %v2252_v11 }
 0x247   : > { %3125 = vmatprep.mubr.msk.bf16.mxu1 %vm3523_vm0, %v3518_v0  ;;  %3122 = vmatpush3.bf16.msra.mxu1 %v3417_v8 }
 0x248   : > { %3123 = vmatprep.subr.bf16.mxu1 %v3518_v0  ;;  %v2515_v0 = vld [vmem:[%s3890_s8] sm:$0x1] }
 0x24b   : > { %3124 = vmatpush3.bf16.msra.mxu1 %v3418_v61 }
 0x287   : > { %v2845_v39 = vpop.f32.mrb[4].mxu0 }
 0x288   : > { %v2846_v12 = vpop.f32.mrb[5].mxu0 }
 0x289   : > { %v2847_v13 = vadd.f32 %v2846_v12, %v2845_v39  ;;  %v2848_v14 = vpop.f32.mrb[6].mxu0 }
 0x28a   : > { %v2849_v15 = vpop.f32.mrb[7].mxu0 }
 0x28b   : > { %v3129_v20 = vadd.f32 %v2847_v13, %v568_v16 }
 0x291   : > { %v2870_v18 = vpop.f32.mrb[8].mxu1 }
 0x292   : > { %v2871_v19 = vpop.f32.mrb[9].mxu1 }
 0x293   : > { %v2872_v21 = vadd.f32 %v2871_v19, %v2870_v18  ;;  %v2873_v22 = vpop.f32.mrb[10].mxu1 }
 0x294   : > { %v2874_v17 = vpop.f32.mrb[11].mxu1 }
 0x295   : > { %v3130_v23 = vadd.f32 %v3129_v20, %v2872_v21 }
 0x2a7   : > { %v2895_v26 = vpop.f32.mrb[8].mxu0 }
 0x2a8   : > { %v2896_v27 = vpop.f32.mrb[9].mxu0 }
 0x2a9   : > { %v2897_v28 = vadd.f32 %v2896_v27, %v2895_v26  ;;  %v2898_v29 = vpop.f32.mrb[10].mxu0 }
 0x2aa   : > { %v2899_v30 = vpop.f32.mrb[11].mxu0 }
 0x2ab   : > { %v3131_v31 = vadd.f32 %v3130_v23, %v2897_v28 }
 0x2c5   : > { %v2920_v32 = vpop.f32.mrb[12].mxu1 }
 0x2c6   : > { %v2921_v33 = vpop.f32.mrb[13].mxu1 }
 0x2c7   : > { %v2922_v34 = vadd.f32 %v2921_v33, %v2920_v32  ;;  %v2923_v35 = vpop.f32.mrb[14].mxu1  ;;  %v2945_v36 = vpop.f32.mrb[12].mxu0 }
 0x2c8   : > { %v2924_v37 = vpop.f32.mrb[15].mxu1  ;;  %v2946_v38 = vpop.f32.mrb[13].mxu0 }
 0x2c9   : > { %v3132_v40 = vadd.f32 %v3131_v31, %v2922_v34  ;;  %v2947_v41 = vadd.f32 %v2946_v38, %v2945_v36  ;;  %v2948_v42 = vpop.f32.mrb[14].mxu0 }
 0x2ca   : > { %v2949_v43 = vpop.f32.mrb[15].mxu0 }
 0x2cb   : > { %v3133_v59 = vadd.f32 %v3132_v40, %v2947_v41 }
 0x2e7   : > { %v2970_v44 = vpop.f32.mrb[16].mxu0 }
 0x2e8   : > { %v2971_v45 = vpop.f32.mrb[17].mxu0 }
 0x2e9   : > { %v2972_v46 = vadd.f32 %v2971_v45, %v2970_v44  ;;  %v2973_v47 = vpop.f32.mrb[18].mxu0 }
 0x2ea   : > { %v2974_v48 = vpop.f32.mrb[19].mxu0 }
 0x2eb   : > { %v3134_v63 = vadd.f32 %v3133_v59, %v2972_v46 }
 0x305   : > { %v2995_v49 = vpop.f32.mrb[16].mxu1 }
 0x306   : > { %v2996_v50 = vpop.f32.mrb[17].mxu1 }
 0x307   : > { %v2997_v51 = vadd.f32 %v2996_v50, %v2995_v49  ;;  %v2998_v52 = vpop.f32.mrb[18].mxu1  ;;  %v3020_v53 = vpop.f32.mrb[20].mxu0 }
 0x308   : > { %v2999_v54 = vpop.f32.mrb[19].mxu1  ;;  %v3021_v55 = vpop.f32.mrb[21].mxu0 }
 0x309   : > { %v3135_v56 = vadd.f32 %v3134_v63, %v2997_v51  ;;  %v3022_v57 = vadd.f32 %v3021_v55, %v3020_v53  ;;  %v3023_v58 = vpop.f32.mrb[22].mxu0 }
 0x30a   : > { %v3024_v60 = vpop.f32.mrb[23].mxu0 }
 0x30b   : > { %v3136_v62 = vadd.f32 %v3135_v56, %v3022_v57 }
 0x319   : > { %v2440_v1 = vpop.f32.mrb[4].mxu1 }
 0x31a   : > { %v3137_v2 = vadd.f32 %v3136_v62, %v2440_v1  ;;  %v3111_v3 = vpop.f32.mrb[5].mxu1 }
 0x31b   : > { %v2443_v4 = vpop.f32.mrb[6].mxu1 }
 0x31c   : > { %v2447_v5 = vmax.f32 %v3137_v2, 0.0  ;;  %v3112_v6 = vpop.f32.mrb[7].mxu1 }
 0x31e   : > { %v2448_v7 = vpack.c.bf16 %v2447_v5, %v2447_v5 }
 0x320   : > { %3118 = vmatmul.mubr.msk.bf16.vlgmr.msra.gmra.mrb[24].mxu0 %vm716_vm11, %v2448_v7 }
 0x3f3   : > { %v2503_v10 = vpop.f32.mrb[24].mxu0 }
 0x3f4   : > { %v2504_v11 = vadd.f32 %v2503_v10, %v2453_v9  ;;  %v3119_v39 = vpop.f32.mrb[25].mxu0 }
 0x3f5   : > { %v2506_v12 = vpop.f32.mrb[26].mxu0 }
 0x3f6   : > { %v2509_v13 = vmax.f32 %v2504_v11, 0.0  ;;  %v3120_v14 = vpop.f32.mrb[27].mxu0 }
 0x3f8   : > { %v2510_v15 = vpack.c.bf16 %v2509_v13, %v2509_v13 }
 0x3fa   : > { %3126 = vmatmul.mubr.msk.bf16.vlgmr.msra.gmra.mrb[20].mxu1 %vm716_vm11, %v2510_v15 }
 0x4cd   : > { %v2565_v16 = vpop.f32.mrb[20].mxu1 }
 0x4ce   : > { %v2566_v18 = vadd.f32 %v2565_v16, %v2515_v0  ;;  %v3127_v19 = vpop.f32.mrb[21].mxu1 }
 0x4cf   : > { %v2568_v20 = vpop.f32.mrb[22].mxu1 }
 0x4d0   : > { %2571 = vst [vmem:[%s339_s25] sm:$0x1] %v2566_v18  ;;  %v3128_v21 = vpop.f32.mrb[23].mxu1 }
 0x4d1   : > { %3460 = shalt.err (!%p3457_p7)
}
 0x4d2   : > { %s3461_s21 = scalar_lea.hbm %s3840_s27, 16  ;;  %s3465_s25 = scalar_lea.hbm %s3891_s9, 32 }
 0x4d3   : > { %p3462_p8 = scmp.ne.s32.totalorder %s3840_s27, %s3461_s21  ;;  %p3466_p1 = scmp.lt.u32.totalorder %s3840_s27, %s3891_s9 }
 0x4d4   : > { %p3467_p0 = scmp.lt.u32.totalorder %s3465_s25, %s3461_s21  ;;  %p3469_p6 = scmp.lt.u32.totalorder %s3461_s21, %s3840_s27 }
 0x4d5   : > { %p3463_p11 = pnand %p3462_p8, %p3902_p9 }
 0x4d6   : > { %p3468_p5 = por %p3467_p0, %p3466_p1 }
 0x4d7   : > { %p3464_p13 = pneg %p3463_p11 }
 0x4d8   : > { %p3470_p10 = por %p3469_p6, %p3468_p5 }
 0x4da   : > { %p3471_p12 = pnand %p3470_p10, %p3464_p13 }
 0x4dc   : > { %3474 = shalt.err (!%p3471_p12)
}
 0x4dd   : > { %3171 = dma.vmem_to_hbm [thread:$0]  (%p3902_p9), %s3842_s26, 16, %s3840_s27, %s2573_s29  }
 0x4de PF: > { %p3183_p2 = scmp.ge.s32.totalorder %s3513_s12, 2  ;;  %s2597_s13 = sand.u32 1, %s3501_s30  }
 0x4df   : > { %p3903_p3 = scmp.ne.s32.totalorder %s3896_s20, 0  ;;  %s2598_s14 = scalar_lea.sflag [#allocation4], %s2597_s13 }
 0x4e1   : > { %p3178_p4 = pnand %p3183_p2, %p3903_p3 }
 0x4e3   : > { %3496 = dma.done.wait (!%p3178_p4), %s2598_s14, 16  }
 0x4e4   : > { %3498 = vsyncadd (!%p3178_p4), %s2598_s14, 4294967280  ;;  %p20_p7 = scmp.ge.s32.totalorder %s3605_s15, 4   ;;  %s3904_s30 = smov %s3505_s10 }
 0x4e5   : > { %s3905_s10 = smov %s3509_s11  ;;  %s3906_s11 = smov %s3616_s18 }
 0x4e6   : > { %s3907_s12 = smov %s3605_s15  ;;  %22 = sbr.rel (!%p20_p7) target bundleno = 4 (0x4), region = 103 }
 0x4ed   :  { %2602 = vsyncpa [#allocation3], 1 }
 0x4ee   :  { %2604 = vsyncpa [#allocation3 + $0x1], 1 }
 0x4ef   :  { %2605 = vsyncpa [#allocation4], 1 }
 0x4f0   :  { %2607 = vsyncpa [#allocation4 + $0x1], 1 }

</bundles_post_ra>
